<compile_context>
chip_gen: v6e
topology: v6e:2x2x1
jax: 0.10.0
libtpu: 0.0.40
codegen_flags: <defaults>
</compile_context>

<pallas_src>
import functools

import jax
import jax.numpy as jnp
from jax.experimental import pallas as pl
from jax.experimental.pallas import tpu as pltpu


# ----------------------------- Pallas kernels ------------------------------ #

def conv_pool_relu_kernel(p_ref, w_ref, b_ref, o_ref, *, images_per_block,
                          rows_per_corner):
    """Per block: (im2col patches) @ W + b, then 2x2 maxpool + ReLU.

    Patch rows are ordered (image, corner, pooled-raster): within each image, rows
    [c*r:(c+1)*r] hold pooling-corner c (c = dh*2+dw), so the pool is an elementwise
    max of 4 contiguous slabs of the GEMM output while it is still in VMEM.
    """
    r = rows_per_corner
    y = jnp.dot(p_ref[...], w_ref[...], preferred_element_type=jnp.float32)
    y = y + b_ref[...]                                   # (1, 128) f32 broadcast
    for m in range(images_per_block):                    # static unroll (small)
        base = m * 4 * r
        pooled = jnp.maximum(
            jnp.maximum(y[base + 0 * r:base + 1 * r], y[base + 1 * r:base + 2 * r]),
            jnp.maximum(y[base + 2 * r:base + 3 * r], y[base + 3 * r:base + 4 * r]))
        o_ref[m * r:(m + 1) * r, :] = jnp.maximum(pooled, 0.0).astype(o_ref.dtype)


def mlp_kernel(x_ref, w1_ref, b1_ref, w2_ref, b2_ref, w3_ref, b3_ref,
               w4_ref, b4_ref, o_ref):
    """Fused l1..l4: bf16 GEMM operands, f32 accumulation, chained entirely in VMEM."""
    f32, bf16 = jnp.float32, jnp.bfloat16
    h = jnp.dot(x_ref[...], w1_ref[...], preferred_element_type=f32) + b1_ref[...]
    h = jnp.maximum(h, 0.0).astype(bf16)
    h = jnp.dot(h, w2_ref[...], preferred_element_type=f32) + b2_ref[...]
    h = jnp.maximum(h, 0.0).astype(bf16)
    h = jnp.dot(h, w3_ref[...], preferred_element_type=f32) + b3_ref[...]
    h = jnp.maximum(h, 0.0).astype(bf16)
    o_ref[...] = (jnp.dot(h, w4_ref[...], preferred_element_type=f32)
                  + b4_ref[...]).astype(o_ref.dtype)


# ------------------------------ Pallas wrappers ----------------------------- #

def _pick_images_per_block(batch, rows_per_image, target_rows=512):
    """Largest divisor of batch with ipb*rows_per_image <= target_rows, while keeping
    at least 2 grid steps when batch >= 2 (both v7x TensorCores fed)."""
    best = 1
    for ipb in range(1, batch + 1):
        if batch % ipb:
            continue
        if ipb * rows_per_image > target_rows:
            break
        if batch >= 2 and batch // ipb < 2:
            continue
        best = ipb
    return best


def conv_pool_relu(patches, w, b, *, batch, rows_per_image, rows_per_corner):
    """One fused conv+pool+relu stage. Grid over image groups; weights stay in VMEM."""
    ipb = _pick_images_per_block(batch, rows_per_image)
    grid = batch // ipb
    kernel = functools.partial(conv_pool_relu_kernel, images_per_block=ipb,
                               rows_per_corner=rows_per_corner)
    kdim = patches.shape[1]
    return pl.pallas_call(
        kernel,
        out_shape=jax.ShapeDtypeStruct((batch * rows_per_corner, 128), jnp.bfloat16),
        grid=(grid,),
        in_specs=[
            pl.BlockSpec((ipb * rows_per_image, kdim), lambda i: (i, 0)),
            pl.BlockSpec(w.shape, lambda i: (0, 0)),     # resident across the grid
            pl.BlockSpec(b.shape, lambda i: (0, 0)),
        ],
        out_specs=pl.BlockSpec((ipb * rows_per_corner, 128), lambda i: (i, 0)),
        compiler_params=pltpu.CompilerParams(dimension_semantics=("parallel",)),
    )(patches, w, b)


def fused_mlp(x, pp):
    """l1..l4 in a single pallas_call; M-tiled grid, all weights/biases resident in VMEM."""
    B, K = x.shape
    tm = min(B, 256)
    if B % tm:
        tm = B
    grid = B // tm
    ws = (pp["l1_w"], pp["l1_b"], pp["l2_w"], pp["l2_b"],
          pp["l3_w"], pp["l3_b"], pp["l4_w"], pp["l4_b"])
    in_specs = [pl.BlockSpec((tm, K), lambda i: (i, 0))]
    in_specs += [pl.BlockSpec(w.shape, lambda i: (0, 0)) for w in ws]
    return pl.pallas_call(
        mlp_kernel,
        out_shape=jax.ShapeDtypeStruct((B, 10), jnp.float32),
        grid=(grid,),
        in_specs=in_specs,
        out_specs=pl.BlockSpec((tm, 10), lambda i: (i, 0)),
        compiler_params=pltpu.CompilerParams(dimension_semantics=("parallel",)),
    )(x, *ws)


# ----------------------- im2col glue (fused by XLA) ------------------------- #

def _conv1_patches(x):
    """x: (B, 28, 28) f32 -> (B*576, 32) bf16 patches.

    Row order (per image): corner (dh,dw) major, then pooled (ph,pw) raster.
    Column order: ki*5+kj, zero-padded 25 -> 32.
    """
    B = x.shape[0]
    cols = [x[:, i:i + 24, j:j + 24] for i in range(5) for j in range(5)]
    cols += [jnp.zeros_like(cols[0])] * 7                    # K pad 25 -> 32
    s = jnp.stack(cols, axis=-1)                             # (B, 24, 24, 32)
    s = s.reshape(B, 12, 2, 12, 2, 32)                       # (b, ph, dh, pw, dw, kk)
    s = jnp.transpose(s, (0, 2, 4, 1, 3, 5))                 # (b, dh, dw, ph, pw, kk)
    return s.reshape(B * 576, 32).astype(jnp.bfloat16)


def _conv2_patches(a1):
    """a1: (B, 12, 12, 128) pooled conv1 output (bf16) -> (B*64, 400) patches.

    Only the 16-channel slice (10 real + 6 exact-zero lanes) enters conv2's K, so
    K = 25*16 = 400 instead of 3200.
    Row order: corner (dh,dw) major, then pooled (ph,pw) raster.
    Column order: (ki*5+kj)*16 + c.
    """
    B = a1.shape[0]
    a1 = a1[..., :16]
    cols = [a1[:, i:i + 8, j:j + 8, :] for i in range(5) for j in range(5)]
    s = jnp.stack(cols, axis=3)                              # (B, 8, 8, 25, 16)
    s = s.reshape(B, 4, 2, 4, 2, 25 * 16)                    # (b, ph, dh, pw, dw, kk*c)
    s = jnp.transpose(s, (0, 2, 4, 1, 3, 5))                 # (b, dh, dw, ph, pw, kk*c)
    return s.reshape(B * 64, 25 * 16)


# --------------------------------- the Net ---------------------------------- #

def init_params(key):
    """Deterministic synthetic parameters in the original PyTorch layouts."""
    ks = jax.random.split(key, 12)

    def u(k, shape, fan_in):
        bound = 1.0 / jnp.sqrt(fan_in)
        return jax.random.uniform(k, shape, jnp.float32, -bound, bound)

    return dict(
        c1_w=u(ks[0], (10, 1, 5, 5), 1 * 5 * 5),
        c1_b=u(ks[1], (10,), 1 * 5 * 5),
        c2_w=u(ks[2], (20, 10, 5, 5), 10 * 5 * 5),
        c2_b=u(ks[3], (20,), 10 * 5 * 5),
        l1_w=u(ks[4], (256, 320), 320), l1_b=u(ks[5], (256,), 320),
        l2_w=u(ks[6], (128, 256), 256), l2_b=u(ks[7], (128,), 256),
        l3_w=u(ks[8], (64, 128), 128),  l3_b=u(ks[9], (64,), 128),
        l4_w=u(ks[10], (10, 64), 64),   l4_b=u(ks[11], (10,), 64),
    )


def prepare_params(p):
    """One-time re-layout of the PyTorch parameters into kernel-ready (bf16 GEMM) form.

    Padded weight columns/rows and padded bias lanes are exact zeros (also exact in
    bf16), so padded output lanes stay zero through bias+ReLU and contribute nothing
    downstream.
    """
    f32, bf16 = jnp.float32, jnp.bfloat16

    # conv1: (10,1,5,5) -> (32,128); rows ki*5+kj (25 real + 7 zero), cols OC pad -> 128.
    w1 = jnp.transpose(p["c1_w"][:, 0], (1, 2, 0)).reshape(25, 10)
    w1p = jnp.zeros((32, 128), f32).at[:25, :10].set(w1).astype(bf16)
    b1p = jnp.zeros((1, 128), f32).at[0, :10].set(p["c1_b"])

    # conv2: (20,10,5,5) -> (400,128); row index (ki*5+kj)*16 + c (IC pad 10 -> 16),
    # cols OC pad -> 128.
    w2 = jnp.transpose(p["c2_w"], (2, 3, 1, 0))                   # (ki, kj, c, oc)
    w2p = (jnp.zeros((5, 5, 16, 128), f32).at[:, :, :10, :20].set(w2)
           .reshape(400, 128).astype(bf16))
    b2p = jnp.zeros((1, 128), f32).at[0, :20].set(p["c2_b"])

    # l1: fold the PyTorch NCHW flatten (idx = c*16 + h*4 + w) into the weight, permuted
    # to the kernel-side flatten (idx = (h*4+w)*20 + c). K stays 320 (no channel padding).
    l1 = jnp.transpose(p["l1_w"].reshape(256, 20, 4, 4), (2, 3, 1, 0))   # (h, w, c, n)
    l1p = l1.reshape(320, 256).astype(bf16)

    return dict(
        c1_w=w1p, c1_b=b1p,
        c2_w=w2p, c2_b=b2p,
        l1_w=l1p,                        l1_b=p["l1_b"].reshape(1, 256),
        l2_w=p["l2_w"].T.astype(bf16),   l2_b=p["l2_b"].reshape(1, 128),   # (256, 128)
        l3_w=p["l3_w"].T.astype(bf16),   l3_b=p["l3_b"].reshape(1, 64),    # (128, 64)
        l4_w=p["l4_w"].T.astype(bf16),   l4_b=p["l4_b"].reshape(1, 10),    # (64, 10)
    )


def net_forward(x_nchw, pp):
    B = x_nchw.shape[0]
    x = x_nchw[:, 0, :, :]                                   # (B, 28, 28), C=1

    # conv1 + pool + relu  (fused kernel)
    p1 = _conv1_patches(x)                                   # (B*576, 32) bf16
    a1 = conv_pool_relu(p1, pp["c1_w"], pp["c1_b"],
                        batch=B, rows_per_image=576, rows_per_corner=144)
    a1 = a1.reshape(B, 12, 12, 128)                          # NHWC, OC zero-padded

    # conv2 + pool + relu  (fused kernel, K = 400)
    p2 = _conv2_patches(a1)                                  # (B*64, 400) bf16
    a2 = conv_pool_relu(p2, pp["c2_w"], pp["c2_b"],
                        batch=B, rows_per_image=64, rows_per_corner=16)

    # Flatten with only the 20 real channels: (B*16, 128) -> (B, 320); l1's weight
    # already absorbs the NCHW-vs-NHWC permutation.
    x2 = a2.reshape(B, 16, 128)[:, :, :20].reshape(B, 320)

    # fused l1..l4
    return fused_mlp(x2, pp)


if __name__ == "__main__":
    key = jax.random.PRNGKey(0)
    k_x, k_p = jax.random.split(key)

    # MNIST-like input: the 320-dim flatten implies 28x28 single-channel images.
    x = jax.random.normal(k_x, (2, 1, 28, 28), dtype=jnp.float32)
    params = prepare_params(init_params(k_p))

    out = jax.jit(net_forward)(x, params)
    out = jax.block_until_ready(out)
    assert out.shape == (2, 10) and out.dtype == jnp.float32
    print("KERNEL_OK")
</pallas_src>

<mosaic_0001>
module attributes {stable_mosaic.version = 11 : i64} {
  func.func @conv_pool_relu_kernel(%arg0: i32, %arg1: memref<576x32xbf16, #tpu.memory_space<vmem>>, %arg2: memref<32x128xbf16, #tpu.memory_space<vmem>>, %arg3: memref<1x128xf32, #tpu.memory_space<vmem>>, %arg4: memref<144x128xbf16, #tpu.memory_space<vmem>>) attributes {dimension_semantics = [#tpu.dimension_semantics<parallel>], iteration_bounds = array<i64: 2>, scalar_prefetch = 0 : i64, scratch_operands = 0 : i64, tpu.core_type = #tpu.core_type<tc>, window_params = [{transform_indices = @transform_0, window_bounds = array<i64: 576, 32>}, {pipeline_mode = #tpu.pipeline_mode<synchronous>, transform_indices = @transform_1, window_bounds = array<i64: 32, 128>}, {pipeline_mode = #tpu.pipeline_mode<synchronous>, transform_indices = @transform_2, window_bounds = array<i64: 1, 128>}, {transform_indices = @transform_3, window_bounds = array<i64: 144, 128>}]} {
    %c0 = arith.constant 0 : index
    %c0_0 = arith.constant 0 : index
    %0 = vector.load %arg1[%c0, %c0_0] : memref<576x32xbf16, #tpu.memory_space<vmem>>, vector<576x32xbf16>
    %c0_1 = arith.constant 0 : index
    %c0_2 = arith.constant 0 : index
    %1 = vector.load %arg2[%c0_1, %c0_2] : memref<32x128xbf16, #tpu.memory_space<vmem>>, vector<32x128xbf16>
    %cst = arith.constant dense<0.000000e+00> : vector<576x128xf32>
    %2 = tpu.matmul %0, %1, %cst {dimension_numbers = #tpu.dot_dimension_numbers<[1], [0], [0], [1], [0, 0, 1, 1], [], []>} : vector<576x32xbf16>, vector<32x128xbf16>, vector<576x128xf32> -> vector<576x128xf32>
    %c0_3 = arith.constant 0 : index
    %c0_4 = arith.constant 0 : index
    %3 = vector.load %arg3[%c0_3, %c0_4] : memref<1x128xf32, #tpu.memory_space<vmem>>, vector<1x128xf32>
    %4 = vector.broadcast %3 : vector<1x128xf32> to vector<576x128xf32>
    %5 = arith.addf %2, %4 : vector<576x128xf32>
    %6 = vector.extract_strided_slice %5 {offsets = [0, 0], sizes = [144, 128], strides = [1, 1]} : vector<576x128xf32> to vector<144x128xf32>
    %7 = vector.extract_strided_slice %5 {offsets = [144, 0], sizes = [144, 128], strides = [1, 1]} : vector<576x128xf32> to vector<144x128xf32>
    %8 = arith.maximumf %6, %7 : vector<144x128xf32>
    %9 = vector.extract_strided_slice %5 {offsets = [288, 0], sizes = [144, 128], strides = [1, 1]} : vector<576x128xf32> to vector<144x128xf32>
    %10 = vector.extract_strided_slice %5 {offsets = [432, 0], sizes = [144, 128], strides = [1, 1]} : vector<576x128xf32> to vector<144x128xf32>
    %11 = arith.maximumf %9, %10 : vector<144x128xf32>
    %12 = arith.maximumf %8, %11 : vector<144x128xf32>
    %cst_5 = arith.constant 0.000000e+00 : f32
    %13 = vector.broadcast %cst_5 : f32 to vector<144x128xf32>
    %14 = arith.maximumf %12, %13 : vector<144x128xf32>
    %15 = arith.truncf %14 : vector<144x128xf32> to vector<144x128xbf16>
    %c0_6 = arith.constant 0 : index
    %c0_7 = arith.constant 0 : index
    %16 = vector.load %arg4[%c0_6, %c0_7] : memref<144x128xbf16, #tpu.memory_space<vmem>>, vector<144x128xbf16>
    tpu.vector_store %arg4[%c0_6, %c0_7], %15 {strides = array<i32>} : memref<144x128xbf16, #tpu.memory_space<vmem>>, vector<144x128xbf16>,
    return
  }
  func.func @transform_0(%arg0: i32) -> (i32, i32) {
    %c0_i32 = arith.constant 0 : i32
    %c0_i32_0 = arith.constant 0 : i32
    return %arg0, %c0_i32 : i32, i32
  }
  func.func @transform_1(%arg0: i32) -> (i32, i32) {
    %c0_i32 = arith.constant 0 : i32
    %c0_i32_0 = arith.constant 0 : i32
    %c0_i32_1 = arith.constant 0 : i32
    return %c0_i32, %c0_i32_0 : i32, i32
  }
  func.func @transform_2(%arg0: i32) -> (i32, i32) {
    %c0_i32 = arith.constant 0 : i32
    %c0_i32_0 = arith.constant 0 : i32
    %c0_i32_1 = arith.constant 0 : i32
    return %c0_i32, %c0_i32_0 : i32, i32
  }
  func.func @transform_3(%arg0: i32) -> (i32, i32) {
    %c0_i32 = arith.constant 0 : i32
    %c0_i32_0 = arith.constant 0 : i32
    return %arg0, %c0_i32 : i32, i32
  }
}

module attributes {stable_mosaic.version = 11 : i64} {
  func.func @conv_pool_relu_kernel(%arg0: i32, %arg1: memref<64x400xbf16, #tpu.memory_space<vmem>>, %arg2: memref<400x128xbf16, #tpu.memory_space<vmem>>, %arg3: memref<1x128xf32, #tpu.memory_space<vmem>>, %arg4: memref<16x128xbf16, #tpu.memory_space<vmem>>) attributes {dimension_semantics = [#tpu.dimension_semantics<parallel>], iteration_bounds = array<i64: 2>, scalar_prefetch = 0 : i64, scratch_operands = 0 : i64, tpu.core_type = #tpu.core_type<tc>, window_params = [{transform_indices = @transform_0, window_bounds = array<i64: 64, 400>}, {pipeline_mode = #tpu.pipeline_mode<synchronous>, transform_indices = @transform_1, window_bounds = array<i64: 400, 128>}, {pipeline_mode = #tpu.pipeline_mode<synchronous>, transform_indices = @transform_2, window_bounds = array<i64: 1, 128>}, {transform_indices = @transform_3, window_bounds = array<i64: 16, 128>}]} {
    %c0 = arith.constant 0 : index
    %c0_0 = arith.constant 0 : index
    %0 = vector.load %arg1[%c0, %c0_0] : memref<64x400xbf16, #tpu.memory_space<vmem>>, vector<64x400xbf16>
    %c0_1 = arith.constant 0 : index
    %c0_2 = arith.constant 0 : index
    %1 = vector.load %arg2[%c0_1, %c0_2] : memref<400x128xbf16, #tpu.memory_space<vmem>>, vector<400x128xbf16>
    %cst = arith.constant dense<0.000000e+00> : vector<64x128xf32>
    %2 = tpu.matmul %0, %1, %cst {dimension_numbers = #tpu.dot_dimension_numbers<[1], [0], [0], [1], [0, 0, 1, 1], [], []>} : vector<64x400xbf16>, vector<400x128xbf16>, vector<64x128xf32> -> vector<64x128xf32>
    %c0_3 = arith.constant 0 : index
    %c0_4 = arith.constant 0 : index
    %3 = vector.load %arg3[%c0_3, %c0_4] : memref<1x128xf32, #tpu.memory_space<vmem>>, vector<1x128xf32>
    %4 = vector.broadcast %3 : vector<1x128xf32> to vector<64x128xf32>
    %5 = arith.addf %2, %4 : vector<64x128xf32>
    %6 = vector.extract_strided_slice %5 {offsets = [0, 0], sizes = [16, 128], strides = [1, 1]} : vector<64x128xf32> to vector<16x128xf32>
    %7 = vector.extract_strided_slice %5 {offsets = [16, 0], sizes = [16, 128], strides = [1, 1]} : vector<64x128xf32> to vector<16x128xf32>
    %8 = arith.maximumf %6, %7 : vector<16x128xf32>
    %9 = vector.extract_strided_slice %5 {offsets = [32, 0], sizes = [16, 128], strides = [1, 1]} : vector<64x128xf32> to vector<16x128xf32>
    %10 = vector.extract_strided_slice %5 {offsets = [48, 0], sizes = [16, 128], strides = [1, 1]} : vector<64x128xf32> to vector<16x128xf32>
    %11 = arith.maximumf %9, %10 : vector<16x128xf32>
    %12 = arith.maximumf %8, %11 : vector<16x128xf32>
    %cst_5 = arith.constant 0.000000e+00 : f32
    %13 = vector.broadcast %cst_5 : f32 to vector<16x128xf32>
    %14 = arith.maximumf %12, %13 : vector<16x128xf32>
    %15 = arith.truncf %14 : vector<16x128xf32> to vector<16x128xbf16>
    %c0_6 = arith.constant 0 : index
    %c0_7 = arith.constant 0 : index
    %16 = vector.load %arg4[%c0_6, %c0_7] : memref<16x128xbf16, #tpu.memory_space<vmem>>, vector<16x128xbf16>
    tpu.vector_store %arg4[%c0_6, %c0_7], %15 {strides = array<i32>} : memref<16x128xbf16, #tpu.memory_space<vmem>>, vector<16x128xbf16>,
    return
  }
  func.func @transform_0(%arg0: i32) -> (i32, i32) {
    %c0_i32 = arith.constant 0 : i32
    %c0_i32_0 = arith.constant 0 : i32
    return %arg0, %c0_i32 : i32, i32
  }
  func.func @transform_1(%arg0: i32) -> (i32, i32) {
    %c0_i32 = arith.constant 0 : i32
    %c0_i32_0 = arith.constant 0 : i32
    %c0_i32_1 = arith.constant 0 : i32
    return %c0_i32, %c0_i32_0 : i32, i32
  }
  func.func @transform_2(%arg0: i32) -> (i32, i32) {
    %c0_i32 = arith.constant 0 : i32
    %c0_i32_0 = arith.constant 0 : i32
    %c0_i32_1 = arith.constant 0 : i32
    return %c0_i32, %c0_i32_0 : i32, i32
  }
  func.func @transform_3(%arg0: i32) -> (i32, i32) {
    %c0_i32 = arith.constant 0 : i32
    %c0_i32_0 = arith.constant 0 : i32
    return %arg0, %c0_i32 : i32, i32
  }
}

module attributes {stable_mosaic.version = 11 : i64} {
  func.func @mlp_kernel(%arg0: i32, %arg1: memref<2x320xbf16, #tpu.memory_space<vmem>>, %arg2: memref<320x256xbf16, #tpu.memory_space<vmem>>, %arg3: memref<1x256xf32, #tpu.memory_space<vmem>>, %arg4: memref<256x128xbf16, #tpu.memory_space<vmem>>, %arg5: memref<1x128xf32, #tpu.memory_space<vmem>>, %arg6: memref<128x64xbf16, #tpu.memory_space<vmem>>, %arg7: memref<1x64xf32, #tpu.memory_space<vmem>>, %arg8: memref<64x10xbf16, #tpu.memory_space<vmem>>, %arg9: memref<1x10xf32, #tpu.memory_space<vmem>>, %arg10: memref<2x10xf32, #tpu.memory_space<vmem>>) attributes {dimension_semantics = [#tpu.dimension_semantics<parallel>], iteration_bounds = array<i64: 1>, scalar_prefetch = 0 : i64, scratch_operands = 0 : i64, tpu.core_type = #tpu.core_type<tc>, window_params = [{transform_indices = @transform_0, window_bounds = array<i64: 2, 320>}, {pipeline_mode = #tpu.pipeline_mode<synchronous>, transform_indices = @transform_1, window_bounds = array<i64: 320, 256>}, {pipeline_mode = #tpu.pipeline_mode<synchronous>, transform_indices = @transform_2, window_bounds = array<i64: 1, 256>}, {pipeline_mode = #tpu.pipeline_mode<synchronous>, transform_indices = @transform_3, window_bounds = array<i64: 256, 128>}, {pipeline_mode = #tpu.pipeline_mode<synchronous>, transform_indices = @transform_4, window_bounds = array<i64: 1, 128>}, {pipeline_mode = #tpu.pipeline_mode<synchronous>, transform_indices = @transform_5, window_bounds = array<i64: 128, 64>}, {pipeline_mode = #tpu.pipeline_mode<synchronous>, transform_indices = @transform_6, window_bounds = array<i64: 1, 64>}, {pipeline_mode = #tpu.pipeline_mode<synchronous>, transform_indices = @transform_7, window_bounds = array<i64: 64, 10>}, {pipeline_mode = #tpu.pipeline_mode<synchronous>, transform_indices = @transform_8, window_bounds = array<i64: 1, 10>}, {transform_indices = @transform_9, window_bounds = array<i64: 2, 10>}]} {
    %c0 = arith.constant 0 : index
    %c0_0 = arith.constant 0 : index
    %0 = vector.load %arg1[%c0, %c0_0] : memref<2x320xbf16, #tpu.memory_space<vmem>>, vector<2x320xbf16>
    %c0_1 = arith.constant 0 : index
    %c0_2 = arith.constant 0 : index
    %1 = vector.load %arg2[%c0_1, %c0_2] : memref<320x256xbf16, #tpu.memory_space<vmem>>, vector<320x256xbf16>
    %cst = arith.constant dense<0.000000e+00> : vector<2x256xf32>
    %2 = tpu.matmul %0, %1, %cst {dimension_numbers = #tpu.dot_dimension_numbers<[1], [0], [0], [1], [0, 0, 1, 1], [], []>} : vector<2x320xbf16>, vector<320x256xbf16>, vector<2x256xf32> -> vector<2x256xf32>
    %c0_3 = arith.constant 0 : index
    %c0_4 = arith.constant 0 : index
    %3 = vector.load %arg3[%c0_3, %c0_4] : memref<1x256xf32, #tpu.memory_space<vmem>>, vector<1x256xf32>
    %4 = vector.broadcast %3 : vector<1x256xf32> to vector<2x256xf32>
    %5 = arith.addf %2, %4 : vector<2x256xf32>
    %cst_5 = arith.constant 0.000000e+00 : f32
    %6 = vector.broadcast %cst_5 : f32 to vector<2x256xf32>
    %7 = arith.maximumf %5, %6 : vector<2x256xf32>
    %8 = arith.truncf %7 : vector<2x256xf32> to vector<2x256xbf16>
    %c0_6 = arith.constant 0 : index
    %c0_7 = arith.constant 0 : index
    %9 = vector.load %arg4[%c0_6, %c0_7] : memref<256x128xbf16, #tpu.memory_space<vmem>>, vector<256x128xbf16>
    %cst_8 = arith.constant dense<0.000000e+00> : vector<2x128xf32>
    %10 = tpu.matmul %8, %9, %cst_8 {dimension_numbers = #tpu.dot_dimension_numbers<[1], [0], [0], [1], [0, 0, 1, 1], [], []>} : vector<2x256xbf16>, vector<256x128xbf16>, vector<2x128xf32> -> vector<2x128xf32>
    %c0_9 = arith.constant 0 : index
    %c0_10 = arith.constant 0 : index
    %11 = vector.load %arg5[%c0_9, %c0_10] : memref<1x128xf32, #tpu.memory_space<vmem>>, vector<1x128xf32>
    %12 = vector.broadcast %11 : vector<1x128xf32> to vector<2x128xf32>
    %13 = arith.addf %10, %12 : vector<2x128xf32>
    %cst_11 = arith.constant 0.000000e+00 : f32
    %14 = vector.broadcast %cst_11 : f32 to vector<2x128xf32>
    %15 = arith.maximumf %13, %14 : vector<2x128xf32>
    %16 = arith.truncf %15 : vector<2x128xf32> to vector<2x128xbf16>
    %c0_12 = arith.constant 0 : index
    %c0_13 = arith.constant 0 : index
    %17 = vector.load %arg6[%c0_12, %c0_13] : memref<128x64xbf16, #tpu.memory_space<vmem>>, vector<128x64xbf16>
    %cst_14 = arith.constant dense<0.000000e+00> : vector<2x64xf32>
    %18 = tpu.matmul %16, %17, %cst_14 {dimension_numbers = #tpu.dot_dimension_numbers<[1], [0], [0], [1], [0, 0, 1, 1], [], []>} : vector<2x128xbf16>, vector<128x64xbf16>, vector<2x64xf32> -> vector<2x64xf32>
    %c0_15 = arith.constant 0 : index
    %c0_16 = arith.constant 0 : index
    %19 = vector.load %arg7[%c0_15, %c0_16] : memref<1x64xf32, #tpu.memory_space<vmem>>, vector<1x64xf32>
    %20 = vector.broadcast %19 : vector<1x64xf32> to vector<2x64xf32>
    %21 = arith.addf %18, %20 : vector<2x64xf32>
    %cst_17 = arith.constant 0.000000e+00 : f32
    %22 = vector.broadcast %cst_17 : f32 to vector<2x64xf32>
    %23 = arith.maximumf %21, %22 : vector<2x64xf32>
    %24 = arith.truncf %23 : vector<2x64xf32> to vector<2x64xbf16>
    %c0_18 = arith.constant 0 : index
    %c0_19 = arith.constant 0 : index
    %25 = vector.load %arg8[%c0_18, %c0_19] : memref<64x10xbf16, #tpu.memory_space<vmem>>, vector<64x10xbf16>
    %cst_20 = arith.constant dense<0.000000e+00> : vector<2x10xf32>
    %26 = tpu.matmul %24, %25, %cst_20 {dimension_numbers = #tpu.dot_dimension_numbers<[1], [0], [0], [1], [0, 0, 1, 1], [], []>} : vector<2x64xbf16>, vector<64x10xbf16>, vector<2x10xf32> -> vector<2x10xf32>
    %c0_21 = arith.constant 0 : index
    %c0_22 = arith.constant 0 : index
    %27 = vector.load %arg9[%c0_21, %c0_22] : memref<1x10xf32, #tpu.memory_space<vmem>>, vector<1x10xf32>
    %28 = vector.broadcast %27 : vector<1x10xf32> to vector<2x10xf32>
    %29 = arith.addf %26, %28 : vector<2x10xf32>
    %c0_23 = arith.constant 0 : index
    %c0_24 = arith.constant 0 : index
    %30 = vector.load %arg10[%c0_23, %c0_24] : memref<2x10xf32, #tpu.memory_space<vmem>>, vector<2x10xf32>
    tpu.vector_store %arg10[%c0_23, %c0_24], %29 {strides = array<i32>} : memref<2x10xf32, #tpu.memory_space<vmem>>, vector<2x10xf32>,
    return
  }
  func.func @transform_0(%arg0: i32) -> (i32, i32) {
    %c0_i32 = arith.constant 0 : i32
    %c0_i32_0 = arith.constant 0 : i32
    return %arg0, %c0_i32 : i32, i32
  }
  func.func @transform_1(%arg0: i32) -> (i32, i32) {
    %c0_i32 = arith.constant 0 : i32
    %c0_i32_0 = arith.constant 0 : i32
    %c0_i32_1 = arith.constant 0 : i32
    return %c0_i32, %c0_i32_0 : i32, i32
  }
  func.func @transform_2(%arg0: i32) -> (i32, i32) {
    %c0_i32 = arith.constant 0 : i32
    %c0_i32_0 = arith.constant 0 : i32
    %c0_i32_1 = arith.constant 0 : i32
    return %c0_i32, %c0_i32_0 : i32, i32
  }
  func.func @transform_3(%arg0: i32) -> (i32, i32) {
    %c0_i32 = arith.constant 0 : i32
    %c0_i32_0 = arith.constant 0 : i32
    %c0_i32_1 = arith.constant 0 : i32
    return %c0_i32, %c0_i32_0 : i32, i32
  }
  func.func @transform_4(%arg0: i32) -> (i32, i32) {
    %c0_i32 = arith.constant 0 : i32
    %c0_i32_0 = arith.constant 0 : i32
    %c0_i32_1 = arith.constant 0 : i32
    return %c0_i32, %c0_i32_0 : i32, i32
  }
  func.func @transform_5(%arg0: i32) -> (i32, i32) {
    %c0_i32 = arith.constant 0 : i32
    %c0_i32_0 = arith.constant 0 : i32
    %c0_i32_1 = arith.constant 0 : i32
    return %c0_i32, %c0_i32_0 : i32, i32
  }
  func.func @transform_6(%arg0: i32) -> (i32, i32) {
    %c0_i32 = arith.constant 0 : i32
    %c0_i32_0 = arith.constant 0 : i32
    %c0_i32_1 = arith.constant 0 : i32
    return %c0_i32, %c0_i32_0 : i32, i32
  }
  func.func @transform_7(%arg0: i32) -> (i32, i32) {
    %c0_i32 = arith.constant 0 : i32
    %c0_i32_0 = arith.constant 0 : i32
    %c0_i32_1 = arith.constant 0 : i32
    return %c0_i32, %c0_i32_0 : i32, i32
  }
  func.func @transform_8(%arg0: i32) -> (i32, i32) {
    %c0_i32 = arith.constant 0 : i32
    %c0_i32_0 = arith.constant 0 : i32
    %c0_i32_1 = arith.constant 0 : i32
    return %c0_i32, %c0_i32_0 : i32, i32
  }
  func.func @transform_9(%arg0: i32) -> (i32, i32) {
    %c0_i32 = arith.constant 0 : i32
    %c0_i32_0 = arith.constant 0 : i32
    return %arg0, %c0_i32 : i32, i32
  }
}

</mosaic_0001>

<bundles_post_ra>
// kernel: net_forward.3
= control target key start
LH: loop header
LB: loop body
LE: loop exit
PB: predicated region body
PF: predicated region fallthrough
CT: control target
= control target key end

     0   :  { %s1463_s12 = smov 0   ;;  %s1754_s0 = inlined_call_operand.vmem [shape: bf16[1152,32], index: 0, kind: input, shape index: {}]   ;;  %s1755_s1 = inlined_call_operand.vmem [shape: bf16[32,128], index: 1, kind: input, shape index: {}]   ;;  %s1756_s2 = inlined_call_operand.vmem [shape: f32[1,128], index: 2, kind: input, shape index: {}]   ;;  %s1757_s3 = inlined_call_operand.vmem [shape: bf16[288,128], index: 3, kind: output, shape index: {}]  }
   0x1 LB: > { %s1098_s13 = sadd.s32 4294967295, %s1441_s12   ;;  %p1102_p0 = scmp.ge.s32.totalorder %s1441_s12, 1  ;;  %s1441_s12 = sphi %s1463_s12, %s13_s12  }
   0x2   : > { %p138_p1 = scmp.lt.s32.totalorder %s1441_s12, 3 }
   0x4   : > { %p139_p2 = pnand %p1102_p0, %p138_p1 }
   0x5   : > { %s162_s16 = smul.u32 (!%p139_p2), 72, %s1098_s13 }
   0x6   : > { %142 = sbr.rel (%p139_p2) target bundleno = 294 (0x126), region = 32 }
   0x7   : > { %p163_p3 = scmp.lt.s32.totalorder (!%p139_p2), %s162_s16, 143  ;;  %s168_s23 = smul.u32 (!%p139_p2), 18, %s1098_s13 }
   0x9   : > { %p169_p4 = scmp.lt.s32.totalorder (!%p139_p2), %s168_s23, 35 }
   0xb   : > { %v1397_v0 = vld [vmem:[%s1755_s1 + $0x8] sm:$0xff]   ;;  %v1398_v1 = vld [vmem:[%s1755_s1] sm:$0xff]   ;;  %s1759_s16 = smov (!%p163_p3, %s162_s16), 143  ;;  %vm450_vm0 = vcmask 261120   ;;  %s1761_s23 = smov (!%p169_p4, %s168_s23), 35 }
   0xc   : > { %1309 = vmatprep.subr.bf16.mxu0 %v1397_v0  ;;  %1385 = vmatprep.subr.bf16.mxu1 %v1397_v0  ;;  %s1103_s19 = sshll.u32 %s1759_s16, 2  ;;  %s1104_s26 = sshll.u32 %s1761_s23, 2 }
   0xd   : > { %1310 = vmatpush3.bf16.msra.mxu0 %v1397_v0  ;;  %1387 = vmatpush3.bf16.msra.mxu1 %v1397_v0  ;;  %s1482_s22 = scalar_lea.vmem %s1754_s0, %s1103_s19  ;;  %s1651_s29 = scalar_lea.vmem %s1757_s3, %s1104_s26 }
   0xe   : > { %1311 = vmatprep.subr.bf16.mxu0 %v1398_v1  ;;  %1386 = vmatprep.subr.bf16.mxu1 %v1398_v1  ;;  %v1399_v2 = vld [vmem:[%s1482_s22] sm:$0xff]   ;;  %v1400_v3 = vld [vmem:[%s1482_s22 + $0x90] sm:$0xff]   ;;  %v1401_v4 = vld [vmem:[%s1482_s22 + $0x8] sm:$0xff]  }
   0xf   : > { %1313 = vmatprep.mubr.msk.bf16.mxu0 %vm450_vm0, %v1399_v2  ;;  %1349 = vmatprep.mubr.msk.bf16.mxu1 %vm450_vm0, %v1400_v3  ;;  %v1402_v5 = vld [vmem:[%s1482_s22 + $0x98] sm:$0xff]   ;;  %v1403_v6 = vld [vmem:[%s1482_s22 + $0x10] sm:$0xff]   ;;  %v1404_v7 = vld [vmem:[%s1482_s22 + $0xa0] sm:$0xff]  }
  0x10   : > { %v1405_v8 = vld [vmem:[%s1482_s22 + $0x18] sm:$0xff]   ;;  %v1406_v9 = vld [vmem:[%s1482_s22 + $0xa8] sm:$0xff]   ;;  %v1407_v10 = vld [vmem:[%s1482_s22 + $0x20] sm:$0xff]  }
  0x11   : > { %1312 = vmatpush3.bf16.msra.mxu0 %v1398_v1  ;;  %1388 = vmatpush3.bf16.msra.mxu1 %v1398_v1  ;;  %v1408_v11 = vld [vmem:[%s1482_s22 + $0xb0] sm:$0xff]   ;;  %v1409_v12 = vld [vmem:[%s1482_s22 + $0x28] sm:$0xff]   ;;  %v1410_v13 = vld [vmem:[%s1482_s22 + $0xb8] sm:$0xff]  }
  0x12   : > { %v1411_v14 = vld [vmem:[%s1482_s22 + $0x30] sm:$0xff]   ;;  %v1412_v15 = vld [vmem:[%s1482_s22 + $0xc0] sm:$0xff]   ;;  %v1413_v16 = vld [vmem:[%s1482_s22 + $0x38] sm:$0xff]  }
  0x13   : > { %v1414_v17 = vld [vmem:[%s1482_s22 + $0xc8] sm:$0xff]   ;;  %v1415_v18 = vld [vmem:[%s1482_s22 + $0x40] sm:$0xff]   ;;  %v1416_v19 = vld [vmem:[%s1482_s22 + $0xd0] sm:$0xff]  }
  0x14   : > { %1314 = vmatmul.mubr.msk.bf16.vlgmr.msra.gmra.mxu0 %vm450_vm0, %v1401_v4  ;;  %1350 = vmatmul.mubr.msk.bf16.vlgmr.msra.gmra.mxu1 %vm450_vm0, %v1402_v5  ;;  %v1417_v20 = vld [vmem:[%s1482_s22 + $0x48] sm:$0xff]   ;;  %v1418_v21 = vld [vmem:[%s1482_s22 + $0xd8] sm:$0xff]   ;;  %v1419_v22 = vld [vmem:[%s1482_s22 + $0x50] sm:$0xff]  }
  0x15   : > { %1317 = vmatprep.mubr.msk.bf16.mxu0 %vm450_vm0, %v1403_v6  ;;  %1353 = vmatprep.mubr.msk.bf16.mxu1 %vm450_vm0, %v1404_v7  ;;  %v1420_v23 = vld [vmem:[%s1482_s22 + $0xe0] sm:$0xff]   ;;  %v1421_v24 = vld [vmem:[%s1482_s22 + $0x58] sm:$0xff]   ;;  %v1422_v25 = vld [vmem:[%s1482_s22 + $0xe8] sm:$0xff]  }
  0x16   : > { %v1423_v26 = vld [vmem:[%s1482_s22 + $0x60] sm:$0xff]   ;;  %v1424_v27 = vld [vmem:[%s1482_s22 + $0xf0] sm:$0xff]   ;;  %v1425_v28 = vld [vmem:[%s1482_s22 + $0x68] sm:$0xff]  }
  0x17   : > { %v1426_v29 = vld [vmem:[%s1482_s22 + $0xf8] sm:$0xff]   ;;  %v1427_v30 = vld [vmem:[%s1482_s22 + $0x70] sm:$0xff]   ;;  %v1428_v31 = vld [vmem:[%s1482_s22 + $0x100] sm:$0xff]  }
  0x18   : > { %v1429_v32 = vld [vmem:[%s1482_s22 + $0x78] sm:$0xff]   ;;  %v1430_v33 = vld [vmem:[%s1482_s22 + $0x108] sm:$0xff]   ;;  %v1431_v34 = vld [vmem:[%s1482_s22 + $0x80] sm:$0xff]  }
  0x19   : > { %v1432_v35 = vld [vmem:[%s1482_s22 + $0x110] sm:$0xff]   ;;  %v1433_v36 = vld [vmem:[%s1482_s22 + $0x88] sm:$0xff]   ;;  %v1434_v37 = vld [vmem:[%s1482_s22 + $0x118] sm:$0xff]  }
  0x1a   : > { %v1605_v6 = vld [vmem:[%s1756_s2] ss:$0 sm:$0xff] }
  0x1c   : > { %1318 = vmatmul.mubr.msk.bf16.gmra.mxu0 %vm450_vm0, %v1405_v8  ;;  %1354 = vmatmul.mubr.msk.bf16.gmra.mxu1 %vm450_vm0, %v1406_v9 }
  0x1d   : > { %1321 = vmatprep.mubr.msk.bf16.mxu0 %vm450_vm0, %v1407_v10  ;;  %1357 = vmatprep.mubr.msk.bf16.mxu1 %vm450_vm0, %v1408_v11 }
  0x24   : > { %1322 = vmatmul.mubr.msk.bf16.gmra.mxu0 %vm450_vm0, %v1409_v12  ;;  %1358 = vmatmul.mubr.msk.bf16.gmra.mxu1 %vm450_vm0, %v1410_v13 }
  0x25   : > { %1325 = vmatprep.mubr.msk.bf16.mxu0 %vm450_vm0, %v1411_v14  ;;  %1361 = vmatprep.mubr.msk.bf16.mxu1 %vm450_vm0, %v1412_v15 }
  0x2c   : > { %1326 = vmatmul.mubr.msk.bf16.gmra.mxu0 %vm450_vm0, %v1413_v16  ;;  %1362 = vmatmul.mubr.msk.bf16.gmra.mxu1 %vm450_vm0, %v1414_v17 }
  0x2d   : > { %1329 = vmatprep.mubr.msk.bf16.mxu0 %vm450_vm0, %v1415_v18  ;;  %1365 = vmatprep.mubr.msk.bf16.mxu1 %vm450_vm0, %v1416_v19 }
  0x34   : > { %1330 = vmatmul.mubr.msk.bf16.gmra.mxu0 %vm450_vm0, %v1417_v20  ;;  %1366 = vmatmul.mubr.msk.bf16.gmra.mxu1 %vm450_vm0, %v1418_v21 }
  0x35   : > { %1333 = vmatprep.mubr.msk.bf16.mxu0 %vm450_vm0, %v1419_v22  ;;  %1369 = vmatprep.mubr.msk.bf16.mxu1 %vm450_vm0, %v1420_v23 }
  0x3c   : > { %1334 = vmatmul.mubr.msk.bf16.gmra.mxu0 %vm450_vm0, %v1421_v24  ;;  %1370 = vmatmul.mubr.msk.bf16.gmra.mxu1 %vm450_vm0, %v1422_v25 }
  0x3d   : > { %1337 = vmatprep.mubr.msk.bf16.mxu0 %vm450_vm0, %v1423_v26  ;;  %1373 = vmatprep.mubr.msk.bf16.mxu1 %vm450_vm0, %v1424_v27 }
  0x44   : > { %1338 = vmatmul.mubr.msk.bf16.gmra.mxu0 %vm450_vm0, %v1425_v28  ;;  %1374 = vmatmul.mubr.msk.bf16.gmra.mxu1 %vm450_vm0, %v1426_v29 }
  0x45   : > { %1341 = vmatprep.mubr.msk.bf16.mxu0 %vm450_vm0, %v1427_v30  ;;  %1377 = vmatprep.mubr.msk.bf16.mxu1 %vm450_vm0, %v1428_v31 }
  0x4c   : > { %1342 = vmatmul.mubr.msk.bf16.gmra.mxu0 %vm450_vm0, %v1429_v32  ;;  %1378 = vmatmul.mubr.msk.bf16.gmra.mxu1 %vm450_vm0, %v1430_v33 }
  0x4d   : > { %1345 = vmatprep.mubr.msk.bf16.mxu0 %vm450_vm0, %v1431_v34  ;;  %1381 = vmatprep.mubr.msk.bf16.mxu1 %vm450_vm0, %v1432_v35 }
  0x54   : > { %1346 = vmatmul.mubr.msk.bf16.gmra.mxu0 %vm450_vm0, %v1433_v36  ;;  %1382 = vmatmul.mubr.msk.bf16.gmra.mxu1 %vm450_vm0, %v1434_v37 }
  0xd4   : > { %v1315_v38 = vpop.f32.mrf.mxu0  ;;  %v1351_v39 = vpop.f32.mrf.mxu1 }
  0xd5   : > { %v602_v29 = vadd.f32 %v1315_v38, %v1605_v6  ;;  %v746_v30 = vadd.f32 %v1351_v39, %v1605_v6 }
  0xd6   : > { %v593_v40 = vpop.f32.mrf.mxu0  ;;  %v737_v41 = vpop.f32.mrf.mxu1 }
  0xd7   : > { %v594_v10 = vadd.f32 %v1605_v6, %v593_v40  ;;  %v738_v11 = vadd.f32 %v1605_v6, %v737_v41 }
  0xd8   : > { %v1316_v42 = vpop.f32.mrf.mxu0  ;;  %v1556_v43 = vpop.f32.mrf.mxu1 }
  0xd9   : > { %v605_v34 = vadd.f32 %v1316_v42, %v1605_v6  ;;  %v749_v41 = vadd.f32 %v1556_v43, %v1605_v6 }
  0xda   : > { %v596_v44 = vpop.f32.mrf.mxu0  ;;  %v740_v45 = vpop.f32.mrf.mxu1 }
  0xdb   : > { %v597_v18 = vadd.f32 %v1605_v6, %v596_v44  ;;  %v741_v21 = vadd.f32 %v1605_v6, %v740_v45 }
  0xdc   : > { %v1319_v46 = vpop.f32.mrf.mxu0  ;;  %v1558_v47 = vpop.f32.mrf.mxu1 }
  0xdd   : > { %v1636_v38 = vadd.f32 %v1319_v46, %v1605_v6 }
  0xde   : > { %v609_v48 = vpop.f32.mrf.mxu0  ;;  %v753_v49 = vpop.f32.mrf.mxu1 }
  0xdf   : > { %v610_v31 = vadd.f32 %v1605_v6, %v609_v48  ;;  %v754_v35 = vadd.f32 %v1605_v6, %v753_v49 }
  0xe0   : > { %v1560_v50 = vpop.f32.mrf.mxu0  ;;  %v1562_v51 = vpop.f32.mrf.mxu1 }
  0xe2   : > { %v1564_v52 = vpop.f32.mrf.mxu0  ;;  %v1566_v53 = vpop.f32.mrf.mxu1 }
  0xe3   : > { %v613_v43 = vadd.f32 %v1605_v6, %v1564_v52  ;;  %v757_v46 = vadd.f32 %v1605_v6, %v1566_v53  ;;  %v1657_v52 = vadd.f32 %v1560_v50, %v1605_v6 }
  0xe4   : > { %v1568_v54 = vpop.f32.mrf.mxu0  ;;  %v1570_v55 = vpop.f32.mrf.mxu1 }
  0xe6   : > { %v1572_v56 = vpop.f32.mrf.mxu0  ;;  %v1574_v57 = vpop.f32.mrf.mxu1 }
  0xe7   : > { %v626_v50 = vadd.f32 %v1605_v6, %v1572_v56 }
  0xe8   : > { %v1576_v58 = vpop.f32.mrf.mxu0  ;;  %v1578_v59 = vpop.f32.mrf.mxu1 }
  0xea   : > { %v1580_v60 = vpop.f32.mrf.mxu0  ;;  %v1582_v61 = vpop.f32.mrf.mxu1 }
  0xec   : > { %v1584_v62 = vpop.f32.mrf.mxu0  ;;  %v1586_v63 = vpop.f32.mrf.mxu1 }
  0xee   : > { %v1588_v0 = vpop.f32.mrf.mxu0  ;;  %v1590_v1 = vpop.f32.mrf.mxu1 }
  0xf0   : > { %v1592_v2 = vpop.f32.mrf.mxu0  ;;  %v1594_v3 = vpop.f32.mrf.mxu1 }
  0xf2   : > { %v1596_v4 = vpop.f32.mrf.mxu0  ;;  %v1600_v5 = vpop.f32.mrf.mxu1 }
  0xf4   : > { %v1331_v7 = vpop.f32.mrf.mxu0  ;;  %v1367_v9 = vpop.f32.mrf.mxu1 }
  0xf5   : > { %v666_v8 = vadd.f32 %v1331_v7, %v1605_v6  ;;  %v810_v12 = vadd.f32 %v1367_v9, %v1605_v6  ;;  %v1642_v9 = vadd.f32 %v1558_v47, %v1605_v6 }
  0xf6   : > { %v1611_v13 = vpop.f32.mrf.mxu0  ;;  %v1613_v14 = vpop.f32.mrf.mxu1 }
  0xf7   : > { %v880_v15 = vmax.f32 %v594_v10, %v666_v8  ;;  %v898_v16 = vmax.f32 %v738_v11, %v810_v12 }
  0xf8   : > { %v1332_v17 = vpop.f32.mrf.mxu0  ;;  %v1368_v20 = vpop.f32.mrf.mxu1 }
  0xf9   : > { %v669_v19 = vadd.f32 %v1332_v17, %v1605_v6  ;;  %v813_v22 = vadd.f32 %v1368_v20, %v1605_v6  ;;  %v916_v26 = vmax.f32 %v880_v15, %v898_v16 }
  0xfa   : > { %v1621_v23 = vpop.f32.mrf.mxu0  ;;  %v1623_v25 = vpop.f32.mrf.mxu1 }
  0xfb   : > { %v881_v24 = vmax.f32 %v597_v18, %v669_v19  ;;  %v899_v27 = vmax.f32 %v741_v21, %v813_v22  ;;  %v934_v48 = vmax.f32 %v916_v26, 0.0  ;;  %v1662_v21 = vadd.f32 %v1562_v51, %v1605_v6 }
  0xfc   : > { %v1335_v28 = vpop.f32.mrf.mxu0  ;;  %v1371_v33 = vpop.f32.mrf.mxu1  ;;  %v1666_v22 = vadd.f32 %v1568_v54, %v1605_v6 }
  0xfd   : > { %v682_v32 = vadd.f32 %v1335_v28, %v1605_v6  ;;  %v917_v36 = vmax.f32 %v881_v24, %v899_v27  ;;  %v826_v37 = vadd.f32 %v1371_v33, %v1605_v6  ;;  %v770_v28 = vadd.f32 %v1605_v6, %v1574_v57 }
  0xfe   : > { %v673_v40 = vpop.f32.mrf.mxu0  ;;  %v817_v45 = vpop.f32.mrf.mxu1 }
  0xff   : > { %v884_v39 = vmax.f32 %v610_v31, %v682_v32  ;;  %v674_v44 = vadd.f32 %v1605_v6, %v673_v40  ;;  %v935_v7 = vmax.f32 %v917_v36, 0.0  ;;  %v902_v42 = vmax.f32 %v754_v35, %v826_v37 }
 0x100   : > { %v818_v49 = vadd.f32 %v1605_v6, %v817_v45  ;;  %v1336_v8 = vpop.f32.mrf.mxu0  ;;  %v1372_v11 = vpop.f32.mrf.mxu1  ;;  %v1678_v36 = vadd.f32 %v1570_v55, %v1605_v6  ;;  %v629_v55 = vadd.f32 %v1605_v6, %v1580_v60 }
 0x101   : > { %v685_v10 = vadd.f32 %v1336_v8, %v1605_v6  ;;  %v1221_v12 = vpack.c.bf16 %v935_v7, %v934_v48  ;;  %v882_v15 = vmax.f32 %v602_v29, %v674_v44  ;;  %v829_v47 = vadd.f32 %v1372_v11, %v1605_v6 }
 0x102   : > { %v900_v16 = vmax.f32 %v746_v30, %v818_v49  ;;  %v676_v17 = vpop.f32.mrf.mxu0  ;;  %v920_v53 = vmax.f32 %v884_v39, %v902_v42  ;;  %v820_v20 = vpop.f32.mrf.mxu1 }
 0x103   : > { %v885_v18 = vmax.f32 %v613_v43, %v685_v10  ;;  %v677_v19 = vadd.f32 %v1605_v6, %v676_v17  ;;  %1222 = vst [vmem:[%s1651_s29] sm:$0xff] %v1221_v12   ;;  %v903_v24 = vmax.f32 %v757_v46, %v829_v47  ;;  %v821_v26 = vadd.f32 %v1605_v6, %v820_v20 }
 0x104   : > { %v1339_v27 = vpop.f32.mrf.mxu0  ;;  %v1375_v51 = vpop.f32.mrf.mxu1  ;;  %v918_v31 = vmax.f32 %v882_v15, %v900_v16  ;;  %v938_v37 = vmax.f32 %v920_v53, 0.0  ;;  %v773_v12 = vadd.f32 %v1605_v6, %v1582_v61 }
 0x105   : > { %v883_v29 = vmax.f32 %v605_v34, %v677_v19  ;;  %v698_v30 = vadd.f32 %v1339_v27, %v1605_v6  ;;  %v921_v32 = vmax.f32 %v885_v18, %v903_v24  ;;  %v901_v33 = vmax.f32 %v749_v41, %v821_v26 }
 0x106   : > { %v842_v54 = vadd.f32 %v1375_v51, %v1605_v6  ;;  %v689_v35 = vpop.f32.mrf.mxu0  ;;  %v833_v39 = vpop.f32.mrf.mxu1  ;;  %v1684_v41 = vadd.f32 %v1576_v58, %v1605_v6  ;;  %v936_v8 = vmax.f32 %v918_v31, 0.0  ;;  %v781_v26 = vadd.f32 %v1578_v59, %v1605_v6 }
 0x107   : > { %v888_v40 = vmax.f32 %v626_v50, %v698_v30  ;;  %v690_v56 = vadd.f32 %v1605_v6, %v689_v35  ;;  %v939_v57 = vmax.f32 %v921_v32, 0.0  ;;  %v919_v34 = vmax.f32 %v883_v29, %v901_v33 }
 0x108   : > { %v906_v44 = vmax.f32 %v770_v28, %v842_v54  ;;  %v834_v45 = vadd.f32 %v1605_v6, %v833_v39  ;;  %v1340_v48 = vpop.f32.mrf.mxu0  ;;  %v1376_v49 = vpop.f32.mrf.mxu1  ;;  %v786_v27 = vadd.f32 %v1605_v6, %v1590_v1  ;;  %v645_v29 = vadd.f32 %v1605_v6, %v1596_v4 }
 0x109   : > { %v886_v7 = vmax.f32 %v1636_v38, %v690_v56  ;;  %v701_v42 = vadd.f32 %v1340_v48, %v1605_v6  ;;  %v1231_v43 = vpack.c.bf16 %v939_v57, %v938_v37  ;;  %v937_v46 = vmax.f32 %v919_v34, 0.0 }
 0x10a   : > { %v904_v10 = vmax.f32 %v1642_v9, %v834_v45  ;;  %v692_v11 = vpop.f32.mrf.mxu0  ;;  %v845_v15 = vadd.f32 %v1376_v49, %v1605_v6  ;;  %v836_v16 = vpop.f32.mrf.mxu1  ;;  %v642_v38 = vadd.f32 %v1605_v6, %v1588_v0  ;;  %v924_v17 = vmax.f32 %v888_v40, %v906_v44 }
 0x10b   : > { %v889_v58 = vmax.f32 %v629_v55, %v701_v42  ;;  %v693_v60 = vadd.f32 %v1605_v6, %v692_v11  ;;  %1264 = vst [vmem:[%s1651_s29 + $0x10] sm:$0xff] %v1231_v43   ;;  %v1226_v47 = vpack.c.bf16 %v937_v46, %v936_v8  ;;  %v837_v53 = vadd.f32 %v1605_v6, %v836_v16 }
 0x10c   : > { %v1343_v9 = vpop.f32.mrf.mxu0  ;;  %v922_v18 = vmax.f32 %v886_v7, %v904_v10  ;;  %v907_v19 = vmax.f32 %v773_v12, %v845_v15  ;;  %v1379_v24 = vpop.f32.mrf.mxu1  ;;  %v789_v59 = vadd.f32 %v1605_v6, %v1600_v5  ;;  %v650_v42 = vadd.f32 %v1584_v62, %v1605_v6 }
 0x10d   : > { %v887_v61 = vmax.f32 %v1657_v52, %v693_v60  ;;  %v714_v20 = vadd.f32 %v1343_v9, %v1605_v6  ;;  %1263 = vst [vmem:[%s1651_s29 + $0x8] sm:$0xff] %v1226_v47   ;;  %v905_v0 = vmax.f32 %v1662_v21, %v837_v53  ;;  %v858_v50 = vadd.f32 %v1379_v24, %v1605_v6 }
 0x10e   : > { %v705_v28 = vpop.f32.mrf.mxu0  ;;  %v925_v30 = vmax.f32 %v889_v58, %v907_v19  ;;  %v849_v31 = vpop.f32.mrf.mxu1  ;;  %v942_v21 = vmax.f32 %v924_v17, 0.0  ;;  %v940_v35 = vmax.f32 %v922_v18, 0.0  ;;  %v794_v49 = vadd.f32 %v1586_v63, %v1605_v6 }
 0x10f   : > { %v892_v52 = vmax.f32 %v642_v38, %v714_v20  ;;  %v706_v51 = vadd.f32 %v1605_v6, %v705_v28  ;;  %v923_v32 = vmax.f32 %v887_v61, %v905_v0  ;;  %v910_v33 = vmax.f32 %v786_v27, %v858_v50 }
 0x110   : > { %v850_v1 = vadd.f32 %v1605_v6, %v849_v31  ;;  %v1344_v54 = vpop.f32.mrf.mxu0  ;;  %v943_v37 = vmax.f32 %v925_v30, 0.0  ;;  %v1380_v56 = vpop.f32.mrf.mxu1  ;;  %v653_v46 = vadd.f32 %v1592_v2, %v1605_v6  ;;  %v658_v62 = vadd.f32 %v1605_v6, %v1611_v13 }
 0x111   : > { %v717_v40 = vadd.f32 %v1344_v54, %v1605_v6  ;;  %v941_v4 = vmax.f32 %v923_v32, 0.0  ;;  %v928_v39 = vmax.f32 %v892_v52, %v910_v33  ;;  %v890_v57 = vmax.f32 %v1666_v22, %v706_v51 }
 0x112   : > { %v861_v34 = vadd.f32 %v1380_v56, %v1605_v6  ;;  %v708_v44 = vpop.f32.mrf.mxu0  ;;  %v1241_v5 = vpack.c.bf16 %v943_v37, %v942_v21  ;;  %v908_v45 = vmax.f32 %v1678_v36, %v850_v1  ;;  %v852_v7 = vpop.f32.mrf.mxu1  ;;  %v802_v63 = vadd.f32 %v1605_v6, %v1613_v14 }
 0x113   : > { %v893_v48 = vmax.f32 %v645_v29, %v717_v40  ;;  %v709_v55 = vadd.f32 %v1605_v6, %v708_v44  ;;  %v1236_v8 = vpack.c.bf16 %v941_v4, %v940_v35  ;;  %v853_v10 = vadd.f32 %v1605_v6, %v852_v7 }
 0x114   : > { %v911_v43 = vmax.f32 %v789_v59, %v861_v34  ;;  %v1347_v22 = vpop.f32.mrf.mxu0  ;;  %1266 = vst [vmem:[%s1651_s29 + $0x20] sm:$0xff] %v1241_v5   ;;  %v1383_v12 = vpop.f32.mrf.mxu1  ;;  %v946_v2 = vmax.f32 %v928_v39, 0.0  ;;  %v926_v16 = vmax.f32 %v890_v57, %v908_v45  ;;  %v661_v14 = vadd.f32 %v1605_v6, %v1621_v23 }
 0x115   : > { %v891_v36 = vmax.f32 %v1684_v41, %v709_v55  ;;  %v730_v11 = vadd.f32 %v1347_v22, %v1605_v6  ;;  %1265 = vst [vmem:[%s1651_s29 + $0x18] sm:$0xff] %v1236_v8   ;;  %v874_v15 = vadd.f32 %v1383_v12, %v1605_v6  ;;  %v909_v38 = vmax.f32 %v781_v26, %v853_v10 }
 0x116   : > { %v929_v58 = vmax.f32 %v893_v48, %v911_v43  ;;  %v721_v60 = vpop.f32.mrf.mxu0  ;;  %v865_v47 = vpop.f32.mrf.mxu1  ;;  %v805_v19 = vadd.f32 %v1605_v6, %v1623_v25  ;;  %v944_v29 = vmax.f32 %v926_v16, 0.0  ;;  %v797_v25 = vadd.f32 %v1594_v3, %v1605_v6 }
 0x117   : > { %v722_v41 = vadd.f32 %v1605_v6, %v721_v60  ;;  %v896_v53 = vmax.f32 %v658_v62, %v730_v11  ;;  %v914_v9 = vmax.f32 %v802_v63, %v874_v15  ;;  %v866_v18 = vadd.f32 %v1605_v6, %v865_v47 }
 0x118   : > { %v947_v17 = vmax.f32 %v929_v58, 0.0  ;;  %v1348_v13 = vpop.f32.mrf.mxu0  ;;  %v927_v61 = vmax.f32 %v891_v36, %v909_v38  ;;  %v1384_v24 = vpop.f32.mrf.mxu1 }
 0x119   : > { %v733_v20 = vadd.f32 %v1348_v13, %v1605_v6  ;;  %v894_v27 = vmax.f32 %v650_v42, %v722_v41  ;;  %v912_v0 = vmax.f32 %v794_v49, %v866_v18  ;;  %v877_v50 = vadd.f32 %v1384_v24, %v1605_v6 }
 0x11a   : > { %v1251_v26 = vpack.c.bf16 %v947_v17, %v946_v2  ;;  %v724_v28 = vpop.f32.mrf.mxu0  ;;  %v945_v30 = vmax.f32 %v927_v61, 0.0  ;;  %v868_v51 = vpop.f32.mrf.mxu1  ;;  %v932_v31 = vmax.f32 %v896_v53, %v914_v9 }
 0x11b   : > { %v897_v52 = vmax.f32 %v661_v14, %v733_v20  ;;  %v725_v23 = vadd.f32 %v1605_v6, %v724_v28  ;;  %v915_v59 = vmax.f32 %v805_v19, %v877_v50  ;;  %v869_v32 = vadd.f32 %v1605_v6, %v868_v51 }
 0x11c   : > { %1268 = vst [vmem:[%s1651_s29 + $0x30] sm:$0xff] %v1251_v26   ;;  %v1246_v33 = vpack.c.bf16 %v945_v30, %v944_v29  ;;  %v930_v54 = vmax.f32 %v894_v27, %v912_v0  ;;  %v950_v37 = vmax.f32 %v932_v31, 0.0 }
 0x11d   : > { %v895_v1 = vmax.f32 %v653_v46, %v725_v23  ;;  %v933_v21 = vmax.f32 %v897_v52, %v915_v59  ;;  %v913_v35 = vmax.f32 %v797_v25, %v869_v32 }
 0x11e   : > { %1267 = vst [vmem:[%s1651_s29 + $0x28] sm:$0xff] %v1246_v33   ;;  %v948_v4 = vmax.f32 %v930_v54, 0.0 }
 0x11f   : > { %v951_v40 = vmax.f32 %v933_v21, 0.0  ;;  %v931_v56 = vmax.f32 %v895_v1, %v913_v35 }
 0x121   : > { %v1261_v39 = vpack.c.bf16 %v951_v40, %v950_v37  ;;  %v949_v57 = vmax.f32 %v931_v56, 0.0 }
 0x123   : > { %1270 = vst [vmem:[%s1651_s29 + $0x40] sm:$0xff] %v1261_v39   ;;  %v1256_v3 = vpack.c.bf16 %v949_v57, %v948_v4 }
 0x125   : > { %1269 = vst [vmem:[%s1651_s29 + $0x38] sm:$0xff] %v1256_v3  }
 0x126 PF: > { %s13_s12 = sadd.s32 1, %s1441_s12  }
 0x127   : > { %p10_p5 = scmp.ge.s32.totalorder %s13_s12, 4  }
 0x129   :  { %12 = sbr.rel (!%p10_p5) target bundleno = 1 (0x1), region = 62 }

// kernel: net_forward.4
= control target key start
LH: loop header
LB: loop body
LE: loop exit
PB: predicated region body
PF: predicated region fallthrough
CT: control target
= control target key end

     0   :  { %s889_s12 = smov 0   ;;  %s1019_s0 = inlined_call_operand.vmem [shape: bf16[128,400], index: 0, kind: input, shape index: {}]   ;;  %s1020_s1 = inlined_call_operand.vmem [shape: bf16[400,128], index: 1, kind: input, shape index: {}]   ;;  %s1021_s2 = inlined_call_operand.vmem [shape: f32[1,128], index: 2, kind: input, shape index: {}]   ;;  %s1022_s3 = inlined_call_operand.vmem [shape: bf16[32,128], index: 3, kind: output, shape index: {}]  }
   0x1 LB: > { %s694_s13 = sadd.s32 4294967295, %s866_s12   ;;  %p698_p0 = scmp.ge.s32.totalorder %s866_s12, 1  ;;  %s866_s12 = sphi %s889_s12, %s13_s12  }
   0x2   : > { %p139_p1 = scmp.lt.s32.totalorder %s866_s12, 3 }
   0x4   : > { %p140_p2 = pnand %p698_p0, %p139_p1 }
   0x5   : > { %s699_s5 = sshll.u32 (!%p140_p2), %s694_s13, 3  ;;  %s702_s21 = sshll.u32 (!%p140_p2), %s694_s13, 1 }
   0x6   : > { %143 = sbr.rel (%p140_p2) target bundleno = 283 (0x11b), region = 32  ;;  %p165_p3 = scmp.lt.s32.totalorder (!%p140_p2), %s699_s5, 15 }
   0x7   : > { %p172_p4 = scmp.lt.s32.totalorder (!%p140_p2), %s702_s21, 3 }
   0xb   : > { %v811_v0 = vld [vmem:[%s1020_s1 + $0x78] sm:$0xff]   ;;  %v868_v1 = vmov 0   ;;  %v814_v4 = vld [vmem:[%s1020_s1 + $0x70] sm:$0xff]   ;;  %v817_v7 = vld [vmem:[%s1020_s1 + $0x68] sm:$0xff]   ;;  %s1024_s5 = smov (!%p165_p3, %s699_s5), 15  ;;  %vm477_vm0 = vcmask 130048  }
   0xc   : > { %555 = vmatprep.subr.bf16.mxu1 %v868_v1  ;;  %v812_v2 = vld [vmem:[%s1020_s1 + $0xb8] sm:$0xff]   ;;  %762 = vmatprep.subr.bf16.mxu0 %v811_v0  ;;  %v815_v5 = vld [vmem:[%s1020_s1 + $0xb0] sm:$0xff]   ;;  %v818_v8 = vld [vmem:[%s1020_s1 + $0xa8] sm:$0xff]   ;;  %s754_s24 = sshll.u32 %s1024_s5, 4  ;;  %s1026_s21 = smov (!%p172_p4, %s702_s21), 3 }
   0xd   : > { %v813_v3 = vld [vmem:[%s1020_s1 + $0x38] sm:$0xff]   ;;  %556 = vmatpush1.bf16.msra.mxu1 %v812_v2  ;;  %v816_v6 = vld [vmem:[%s1020_s1 + $0x30] sm:$0xff]   ;;  %v819_v9 = vld [vmem:[%s1020_s1 + $0x28] sm:$0xff]   ;;  %s968_s5 = scalar_lea.vmem %s1019_s0, %s754_s24  ;;  %s703_s13 = sshll.u32 %s1026_s21, 2 }
   0xe   : > { %763 = vmatpush3.bf16.msra.mxu0 %v813_v3  ;;  %557 = vmatprep.subr.bf16.mxu1 %v868_v1  ;;  %v820_v10 = vld [vmem:[%s1020_s1 + $0x60] sm:$0xff]   ;;  %v823_v13 = vld [vmem:[%s1020_s1 + $0x58] sm:$0xff]   ;;  %v826_v16 = vld [vmem:[%s1020_s1 + $0x50] sm:$0xff]   ;;  %s175_s24 = scalar_lea.vmem %s1022_s3, %s703_s13 }
   0xf   : > { %764 = vmatprep.subr.bf16.mxu0 %v814_v4  ;;  %v821_v11 = vld [vmem:[%s1020_s1 + $0xa0] sm:$0xff]   ;;  %v824_v14 = vld [vmem:[%s1020_s1 + $0x98] sm:$0xff]   ;;  %v827_v17 = vld [vmem:[%s1020_s1 + $0x90] sm:$0xff]  }
  0x10   : > { %v822_v12 = vld [vmem:[%s1020_s1 + $0x20] sm:$0xff]   ;;  %v825_v15 = vld [vmem:[%s1020_s1 + $0x18] sm:$0xff]   ;;  %v828_v18 = vld [vmem:[%s1020_s1 + $0x10] sm:$0xff]  }
  0x11   : > { %558 = vmatpush1.bf16.msra.mxu1 %v815_v5  ;;  %v829_v19 = vld [vmem:[%s1020_s1 + $0x48] sm:$0xff]   ;;  %v832_v22 = vld [vmem:[%s1020_s1 + $0x40] sm:$0xff]  }
  0x12   : > { %765 = vmatpush3.bf16.msra.mxu0 %v816_v6  ;;  %559 = vmatprep.subr.bf16.mxu1 %v868_v1  ;;  %v830_v20 = vld [vmem:[%s1020_s1 + $0x88] sm:$0xff]   ;;  %v837_v23 = vld [vmem:[%s968_s5 + $0x4] ss:$16 sps:$4 sm:$0xff]   ;;  %v835_v27 = vld [vmem:[%s968_s5] ss:$16 sps:$4 sm:$0xff]  }
  0x13   : > { %766 = vmatprep.subr.bf16.mxu0 %v817_v7  ;;  %v831_v21 = vld [vmem:[%s1020_s1 + $0x8] sm:$0xff]   ;;  %v833_v24 = vld [vmem:[%s1020_s1 + $0x80] sm:$0xff]   ;;  %522 = vmatprep.mubr.bf16.mxu0 %v837_v23 }
  0x14   : > { %v841_v25 = vld [vmem:[%s968_s5 + $0xc] ss:$16 sps:$4 sm:$0xff]   ;;  %v834_v26 = vld [vmem:[%s1020_s1] sm:$0xff]   ;;  %v839_v30 = vld [vmem:[%s968_s5 + $0x8] ss:$16 sps:$4 sm:$0xff]  }
  0x15   : > { %560 = vmatpush1.bf16.msra.mxu1 %v818_v8  ;;  %746 = vmatprep.mubr.msk.bf16.mxu1 %vm477_vm0, %v841_v25  ;;  %v838_v28 = vld [vmem:[%s1020_s1 + $0xc0] sm:$0xff]   ;;  %v845_v31 = vld [vmem:[%s968_s5 + $0x2c] ss:$16 sps:$4 sm:$0xff]   ;;  %v847_v34 = vld [vmem:[%s968_s5 + $0x28] ss:$16 sps:$4 sm:$0xff]  }
  0x16   : > { %767 = vmatpush3.bf16.msra.mxu0 %v819_v9  ;;  %561 = vmatprep.subr.bf16.mxu1 %v868_v1  ;;  %v842_v29 = vld [vmem:[%s968_s5 + $0x24] ss:$16 sps:$4 sm:$0xff]   ;;  %v844_v32 = vld [vmem:[%s968_s5 + $0x20] ss:$16 sps:$4 sm:$0xff]   ;;  %v851_v35 = vld [vmem:[%s968_s5 + $0x4c] ss:$16 sps:$4 sm:$0xff]  }
  0x17   : > { %768 = vmatprep.subr.bf16.mxu0 %v820_v10  ;;  %v848_v33 = vld [vmem:[%s968_s5 + $0x44] ss:$16 sps:$4 sm:$0xff]   ;;  %v850_v36 = vld [vmem:[%s968_s5 + $0x40] ss:$16 sps:$4 sm:$0xff]   ;;  %v853_v38 = vld [vmem:[%s968_s5 + $0x48] ss:$16 sps:$4 sm:$0xff]  }
  0x18   : > { %v854_v37 = vld [vmem:[%s968_s5 + $0x64] ss:$16 sps:$4 sm:$0xff]   ;;  %v857_v39 = vld [vmem:[%s968_s5 + $0x6c] ss:$16 sps:$4 sm:$0xff]   ;;  %v856_v40 = vld [vmem:[%s968_s5 + $0x60] ss:$16 sps:$4 sm:$0xff]  }
  0x19   : > { %562 = vmatpush1.bf16.msra.mxu1 %v821_v11  ;;  %v859_v41 = vld [vmem:[%s968_s5 + $0x68] ss:$16 sps:$4 sm:$0xff]   ;;  %v704_v5 = vld [vmem:[%s1021_s2] ss:$0 sm:$0xff] }
  0x1a   : > { %769 = vmatpush3.bf16.msra.mxu0 %v822_v12  ;;  %563 = vmatprep.subr.bf16.mxu1 %v868_v1 }
  0x1b   : > { %770 = vmatprep.subr.bf16.mxu0 %v823_v13 }
  0x1d   : > { %564 = vmatpush1.bf16.msra.mxu1 %v824_v14 }
  0x1e   : > { %771 = vmatpush3.bf16.msra.mxu0 %v825_v15  ;;  %565 = vmatprep.subr.bf16.mxu1 %v868_v1 }
  0x1f   : > { %772 = vmatprep.subr.bf16.mxu0 %v826_v16 }
  0x21   : > { %566 = vmatpush1.bf16.msra.mxu1 %v827_v17 }
  0x22   : > { %773 = vmatpush3.bf16.msra.mxu0 %v828_v18  ;;  %567 = vmatprep.subr.bf16.mxu1 %v868_v1 }
  0x23   : > { %774 = vmatprep.subr.bf16.mxu0 %v829_v19 }
  0x25   : > { %568 = vmatpush1.bf16.msra.mxu1 %v830_v20 }
  0x26   : > { %775 = vmatpush3.bf16.msra.mxu0 %v831_v21  ;;  %569 = vmatprep.subr.bf16.mxu1 %v868_v1 }
  0x27   : > { %776 = vmatprep.subr.bf16.mxu0 %v832_v22 }
  0x29   : > { %570 = vmatpush1.bf16.msra.mxu1 %v833_v24 }
  0x2a   : > { %777 = vmatpush3.bf16.msra.mxu0 %v834_v26  ;;  %585 = vmatprep.subr.bf16.mxu1 %v868_v1 }
  0x2d   : > { %523 = vmatmul.mubr.bf16.vlgmr.msra.gmra.mxu0 %v835_v27  ;;  %586 = vmatpush2.bf16.msra.mxu1 %v838_v28 }
  0x2e   : > { %530 = vmatprep.mubr.bf16.mxu0 %v842_v29 }
  0x30   : > { %588 = vmatmul.mubr.bf16.vlgmr.msra.gmra.mxu1 %v839_v30 }
  0x31   : > { %747 = vmatprep.mubr.msk.bf16.mxu1 %vm477_vm0, %v845_v31 }
  0x35   : > { %531 = vmatmul.mubr.bf16.gmra.mxu0 %v844_v32 }
  0x36   : > { %538 = vmatprep.mubr.bf16.mxu0 %v848_v33 }
  0x38   : > { %596 = vmatmul.mubr.bf16.gmra.mxu1 %v847_v34 }
  0x39   : > { %748 = vmatprep.mubr.msk.bf16.mxu1 %vm477_vm0, %v851_v35 }
  0x3d   : > { %539 = vmatmul.mubr.bf16.gmra.mxu0 %v850_v36 }
  0x3e   : > { %546 = vmatprep.mubr.bf16.mxu0 %v854_v37 }
  0x40   : > { %604 = vmatmul.mubr.bf16.gmra.mxu1 %v853_v38 }
  0x41   : > { %749 = vmatprep.mubr.msk.bf16.mxu1 %vm477_vm0, %v857_v39 }
  0x45   : > { %547 = vmatmul.mubr.bf16.gmra.mxu0 %v856_v40 }
  0x48   : > { %612 = vmatmul.mubr.bf16.gmra.mxu1 %v859_v41 }
  0xed   : > { %v778_v42 = vpop.f32.mrf.mxu0 }
  0xef   : > { %v779_v43 = vpop.f32.mrf.mxu0 }
  0xf0   : > { %v589_v44 = vpop.f32.mrf.mxu1  ;;  %v780_v4 = vadd.f32 %v779_v43, %v778_v42 }
  0xf1   : > { %v781_v45 = vpop.f32.mrf.mxu0 }
  0xf2   : > { %v591_v46 = vpop.f32.mrf.mxu1  ;;  %v525_v16 = vadd.f32 %v780_v4, %v704_v5 }
  0xf3   : > { %v782_v47 = vpop.f32.mrf.mxu0 }
  0xf4   : > { %v592_v48 = vpop.f32.mrf.mxu1  ;;  %v783_v8 = vadd.f32 %v782_v47, %v781_v45  ;;  %v590_v28 = vadd.f32 %v589_v44, %v525_v16 }
  0xf5   : > { %v784_v49 = vpop.f32.mrf.mxu0 }
  0xf6   : > { %v594_v50 = vpop.f32.mrf.mxu1  ;;  %v528_v20 = vadd.f32 %v783_v8, %v704_v5 }
  0xf7   : > { %v785_v51 = vpop.f32.mrf.mxu0 }
  0xf8   : > { %v597_v52 = vpop.f32.mrf.mxu1  ;;  %v786_v63 = vadd.f32 %v785_v51, %v784_v49  ;;  %v593_v33 = vadd.f32 %v592_v48, %v528_v20 }
  0xf9   : > { %v787_v53 = vpop.f32.mrf.mxu0 }
  0xfa   : > { %v599_v54 = vpop.f32.mrf.mxu1  ;;  %v533_v9 = vadd.f32 %v786_v63, %v704_v5 }
  0xfb   : > { %v788_v55 = vpop.f32.mrf.mxu0 }
  0xfc   : > { %v600_v56 = vpop.f32.mrf.mxu1  ;;  %v789_v6 = vadd.f32 %v788_v55, %v787_v53  ;;  %v598_v21 = vadd.f32 %v597_v52, %v533_v9 }
  0xfd   : > { %v790_v57 = vpop.f32.mrf.mxu0 }
  0xfe   : > { %v602_v58 = vpop.f32.mrf.mxu1  ;;  %v536_v17 = vadd.f32 %v789_v6, %v704_v5  ;;  %v620_v34 = vmax.f32 %v590_v28, %v598_v21 }
  0xff   : > { %v791_v59 = vpop.f32.mrf.mxu0 }
 0x100   : > { %v605_v60 = vpop.f32.mrf.mxu1  ;;  %v792_v1 = vadd.f32 %v791_v59, %v790_v57  ;;  %v601_v29 = vadd.f32 %v600_v56, %v536_v17 }
 0x101   : > { %v793_v61 = vpop.f32.mrf.mxu0 }
 0x102   : > { %v607_v62 = vpop.f32.mrf.mxu1  ;;  %v541_v11 = vadd.f32 %v792_v1, %v704_v5  ;;  %v621_v37 = vmax.f32 %v593_v33, %v601_v29 }
 0x103   : > { %v794_v0 = vpop.f32.mrf.mxu0 }
 0x104   : > { %v608_v2 = vpop.f32.mrf.mxu1  ;;  %v795_v12 = vadd.f32 %v794_v0, %v793_v61  ;;  %v606_v23 = vadd.f32 %v605_v60, %v541_v11 }
 0x105   : > { %v796_v3 = vpop.f32.mrf.mxu0 }
 0x106   : > { %v610_v7 = vpop.f32.mrf.mxu1  ;;  %v544_v24 = vadd.f32 %v795_v12, %v704_v5 }
 0x107   : > { %v797_v10 = vpop.f32.mrf.mxu0 }
 0x108   : > { %v798_v13 = vadd.f32 %v797_v10, %v796_v3  ;;  %v613_v14 = vpop.f32.mrf.mxu1  ;;  %v609_v35 = vadd.f32 %v608_v2, %v544_v24 }
 0x109   : > { %v799_v15 = vpop.f32.mrf.mxu0 }
 0x10a   : > { %v549_v18 = vadd.f32 %v798_v13, %v704_v5  ;;  %v615_v19 = vpop.f32.mrf.mxu1 }
 0x10b   : > { %v800_v22 = vpop.f32.mrf.mxu0 }
 0x10c   : > { %v614_v25 = vadd.f32 %v613_v14, %v549_v18  ;;  %v801_v26 = vadd.f32 %v800_v22, %v799_v15  ;;  %v616_v27 = vpop.f32.mrf.mxu1 }
 0x10e   : > { %v622_v30 = vmax.f32 %v606_v23, %v614_v25  ;;  %v552_v31 = vadd.f32 %v801_v26, %v704_v5  ;;  %v618_v32 = vpop.f32.mrf.mxu1 }
 0x110   : > { %v617_v36 = vadd.f32 %v616_v27, %v552_v31  ;;  %v624_v38 = vmax.f32 %v620_v34, %v622_v30 }
 0x112   : > { %v623_v39 = vmax.f32 %v609_v35, %v617_v36  ;;  %v626_v41 = vmax.f32 %v624_v38, 0.0 }
 0x114   : > { %v625_v40 = vmax.f32 %v621_v37, %v623_v39 }
 0x116   : > { %v627_v42 = vmax.f32 %v625_v40, 0.0 }
 0x118   : > { %v760_v43 = vpack.c.bf16 %v627_v42, %v626_v41 }
 0x11a   : > { %761 = vst [vmem:[%s175_s24] sm:$0xff] %v760_v43  }
 0x11b PF: > { %s13_s12 = sadd.s32 1, %s866_s12  }
 0x11c   : > { %p10_p5 = scmp.ge.s32.totalorder %s13_s12, 4  }
 0x11e   :  { %12 = sbr.rel (!%p10_p5) target bundleno = 1 (0x1), region = 62 }

// kernel: net_forward.5
= control target key start
LH: loop header
LB: loop body
LE: loop exit
PB: predicated region body
PF: predicated region fallthrough
CT: control target
= control target key end

     0   :  { %v1048_v2 = vmov 0   ;;  %v77_v10 = vlaneseq  ;;  %v1049_v12 = vmov 1966171168   ;;  %vm313_vm0 = vcmask 523264   ;;  %s1346_s0 = inlined_call_operand.vmem [shape: bf16[2,320], index: 0, kind: input, shape index: {}]   ;;  %s1347_s1 = inlined_call_operand.vmem [shape: bf16[320,256], index: 1, kind: input, shape index: {}]   ;;  %s1348_s2 = inlined_call_operand.vmem [shape: f32[1,256], index: 2, kind: input, shape index: {}]   ;;  %s1349_s3 = inlined_call_operand.vmem [shape: bf16[256,128], index: 3, kind: input, shape index: {}]   ;;  %s1350_s4 = inlined_call_operand.vmem [shape: f32[1,128], index: 4, kind: input, shape index: {}]   ;;  %s1351_s5 = inlined_call_operand.vmem [shape: bf16[128,64], index: 5, kind: input, shape index: {}]   ;;  %s1352_s6 = inlined_call_operand.vmem [shape: f32[1,64], index: 6, kind: input, shape index: {}]   ;;  %s1353_s7 = inlined_call_operand.vmem [shape: bf16[64,10], index: 7, kind: input, shape index: {}]   ;;  %s1354_s8 = inlined_call_operand.vmem [shape: f32[1,10], index: 8, kind: input, shape index: {}]   ;;  %s1355_s9 = inlined_call_operand.hbm [shape: f32[2,10], index: 9, kind: output, shape index: {}]  }
   0x1   :  { %v938_v0 = vld [vmem:[%s1347_s1 + $0x74] ss:$8 sps:$4 sm:$0xff]   ;;  %v940_v1 = vld [vmem:[%s1347_s1 + $0x70] ss:$8 sps:$4 sm:$0xff]   ;;  %390 = vmatprep.mubr.bf16.mxu1 %v1048_v2  ;;  %v941_v3 = vld [vmem:[%s1347_s1 + $0x64] ss:$8 sps:$4 sm:$0xff]   ;;  %v97_v13 = vunpack.c.l.s4 %v1049_v12 }
   0x2   :  { %317 = vmatprep.subr.bf16.mxu0 %v938_v0  ;;  %v943_v4 = vld [vmem:[%s1347_s1 + $0x60] ss:$8 sps:$4 sm:$0xff]   ;;  %v944_v5 = vld [vmem:[%s1347_s1 + $0x54] ss:$8 sps:$4 sm:$0xff]   ;;  %v946_v6 = vld [vmem:[%s1347_s1 + $0x50] ss:$8 sps:$4 sm:$0xff]  }
   0x3   :  { %318 = vmatpush1.bf16.msra.mxu0 %v940_v1  ;;  %v947_v7 = vld [vmem:[%s1347_s1 + $0x44] ss:$8 sps:$4 sm:$0xff]   ;;  %v949_v8 = vld [vmem:[%s1347_s1 + $0x40] ss:$8 sps:$4 sm:$0xff]   ;;  %v950_v9 = vld [vmem:[%s1347_s1 + $0x34] ss:$8 sps:$4 sm:$0xff]   ;;  %v98_v21 = vunpack.c.0.s8 %v97_v13 }
   0x4   :  { %319 = vmatprep.subr.bf16.mxu0 %v941_v3  ;;  %v952_v11 = vld [vmem:[%s1347_s1 + $0x30] ss:$8 sps:$4 sm:$0xff]   ;;  %v953_v14 = vld [vmem:[%s1347_s1 + $0x24] ss:$8 sps:$4 sm:$0xff]   ;;  %v973_v15 = vld [vmem:[%s1347_s1 + $0x134] ss:$8 sps:$4 sm:$0xff]  }
   0x5   :  { %v976_v16 = vld [vmem:[%s1347_s1 + $0x130] ss:$8 sps:$4 sm:$0xff]   ;;  %366 = vmatprep.subr.bf16.mxu1 %v973_v15  ;;  %v1142_v17 = vshrl.u32 %v77_v10, 7  ;;  %v955_v18 = vld [vmem:[%s1347_s1 + $0x20] ss:$8 sps:$4 sm:$0xff]  }
   0x6   :  { %367 = vmatpush1.bf16.msra.mxu1 %v976_v16  ;;  %v979_v19 = vld [vmem:[%s1347_s1 + $0x124] ss:$8 sps:$4 sm:$0xff]   ;;  %v982_v20 = vld [vmem:[%s1347_s1 + $0x120] ss:$8 sps:$4 sm:$0xff]   ;;  %v956_v22 = vld [vmem:[%s1347_s1 + $0x14] ss:$8 sps:$4 sm:$0xff]  }
   0x7   :  { %320 = vmatpush1.bf16.msra.mxu0 %v943_v4  ;;  %368 = vmatprep.subr.bf16.mxu1 %v979_v19  ;;  %v985_v23 = vld [vmem:[%s1347_s1 + $0x114] ss:$8 sps:$4 sm:$0xff]   ;;  %v958_v24 = vld [vmem:[%s1347_s1 + $0x10] ss:$8 sps:$4 sm:$0xff]   ;;  %v101_v26 = vsub.s32 %v98_v21, %v1142_v17  ;;  %v959_v27 = vld [vmem:[%s1347_s1 + $0x4] ss:$8 sps:$4 sm:$0xff]  }
   0x8   :  { %321 = vmatprep.subr.bf16.mxu0 %v944_v5  ;;  %v988_v25 = vld [vmem:[%s1347_s1 + $0x110] ss:$8 sps:$4 sm:$0xff]   ;;  %v991_v28 = vld [vmem:[%s1347_s1 + $0x104] ss:$8 sps:$4 sm:$0xff]   ;;  %v961_v29 = vld [vmem:[%s1347_s1] ss:$8 sps:$4 sm:$0xff]  }
   0x9   :  { %v791_v30 = vld.sshfl [vmem:[%s1346_s0] sm:$0x13 pattern:$0x75316420]  ;;  %v962_v34 = vld [vmem:[%s1347_s1 + $0xf4] ss:$8 sps:$4 sm:$0xff]  }
   0xa   :  { %369 = vmatpush1.bf16.msra.mxu1 %v982_v20  ;;  %v994_v31 = vld [vmem:[%s1347_s1 + $0x100] ss:$8 sps:$4 sm:$0xff]   ;;  %v102_v32 = vrot.slane %v791_v30, %v101_v26  ;;  %v95_v33 = vcombine.high %v791_v30, %v791_v30  ;;  %v964_v35 = vld [vmem:[%s1347_s1 + $0xf0] ss:$8 sps:$4 sm:$0xff]   ;;  %v965_v38 = vld [vmem:[%s1347_s1 + $0xe4] ss:$8 sps:$4 sm:$0xff]  }
   0xb   :  { %322 = vmatpush1.bf16.msra.mxu0 %v946_v6  ;;  %370 = vmatprep.subr.bf16.mxu1 %v985_v23  ;;  %v998_v37 = vld [vmem:[%s1349_s3 + $0x78] sm:$0xff]   ;;  %v1000_v41 = vld [vmem:[%s1349_s3 + $0x70] sm:$0xff]   ;;  %v967_v42 = vld [vmem:[%s1347_s1 + $0xe0] ss:$8 sps:$4 sm:$0xff]  }
   0xc   :  { %323 = vmatprep.subr.bf16.mxu0 %v947_v7  ;;  %v109_v36 = vrot.slane %v95_v33, %v101_v26  ;;  %v110_v39 = vcombine.high %v102_v32, %v102_v32  ;;  %v999_v40 = vld [vmem:[%s1349_s3 + $0x38] sm:$0xff]   ;;  %v1001_v44 = vld [vmem:[%s1349_s3 + $0x30] sm:$0xff]   ;;  %v1002_v45 = vld [vmem:[%s1349_s3 + $0x68] sm:$0xff]  }
   0xd   :  { %v968_v43 = vld [vmem:[%s1347_s1 + $0xd4] ss:$8 sps:$4 sm:$0xff]   ;;  %v970_v46 = vld [vmem:[%s1347_s1 + $0xd0] ss:$8 sps:$4 sm:$0xff]   ;;  %v1003_v47 = vld [vmem:[%s1349_s3 + $0x28] sm:$0xff]  }
   0xe   :  { %371 = vmatpush1.bf16.msra.mxu1 %v988_v25  ;;  %349 = vmatprep.mubr.bf16.mxu0 %v109_v36  ;;  %v971_v48 = vld [vmem:[%s1347_s1 + $0xc4] ss:$8 sps:$4 sm:$0xff]   ;;  %v975_v50 = vld [vmem:[%s1347_s1 + $0xc0] ss:$8 sps:$4 sm:$0xff]   ;;  %v977_v52 = vld [vmem:[%s1347_s1 + $0xb4] ss:$8 sps:$4 sm:$0xff]  }
   0xf   :  { %324 = vmatpush1.bf16.msra.mxu0 %v949_v8  ;;  %372 = vmatprep.subr.bf16.mxu1 %v991_v28  ;;  %v1004_v49 = vld [vmem:[%s1349_s3 + $0x60] sm:$0xff]   ;;  %v981_v53 = vld [vmem:[%s1347_s1 + $0xb0] ss:$8 sps:$4 sm:$0xff]  }
  0x10   :  { %325 = vmatprep.subr.bf16.mxu0 %v950_v9  ;;  %v1005_v51 = vld [vmem:[%s1349_s3 + $0x20] sm:$0xff]  }
  0x11   :  { %v983_v54 = vld [vmem:[%s1347_s1 + $0xa4] ss:$8 sps:$4 sm:$0xff]  }
  0x12   :  { %373 = vmatpush1.bf16.msra.mxu1 %v994_v31 }
  0x13   :  { %326 = vmatpush1.bf16.msra.mxu0 %v952_v11  ;;  %865 = vmatprep.subr.bf16.mxu1 %v998_v37 }
  0x14   :  { %327 = vmatprep.subr.bf16.mxu0 %v953_v14 }
  0x15   :  { %832 = vmatmul.mubr.msk.bf16.vlgmr.msra.gmra.mxu1 %vm313_vm0, %v110_v39 }
  0x16   :  { %866 = vmatpush3.bf16.msra.mxu1 %v999_v40 }
  0x17   :  { %328 = vmatpush1.bf16.msra.mxu0 %v955_v18  ;;  %867 = vmatprep.subr.bf16.mxu1 %v1000_v41 }
  0x18   :  { %329 = vmatprep.subr.bf16.mxu0 %v956_v22 }
  0x1a   :  { %868 = vmatpush3.bf16.msra.mxu1 %v1001_v44 }
  0x1b   :  { %330 = vmatpush1.bf16.msra.mxu0 %v958_v24  ;;  %869 = vmatprep.subr.bf16.mxu1 %v1002_v45 }
  0x1c   :  { %331 = vmatprep.subr.bf16.mxu0 %v959_v27 }
  0x1e   :  { %870 = vmatpush3.bf16.msra.mxu1 %v1003_v47 }
  0x1f   :  { %332 = vmatpush1.bf16.msra.mxu0 %v961_v29  ;;  %871 = vmatprep.subr.bf16.mxu1 %v1004_v49 }
  0x20   :  { %333 = vmatprep.subr.bf16.mxu0 %v962_v34 }
  0x22   :  { %872 = vmatpush3.bf16.msra.mxu1 %v1005_v51 }
  0x23   :  { %334 = vmatpush2.bf16.msra.mxu0 %v964_v35 }
  0x24   :  { %335 = vmatprep.subr.bf16.mxu0 %v965_v38 }
  0x27   :  { %336 = vmatpush2.bf16.msra.mxu0 %v967_v42 }
  0x28   :  { %337 = vmatprep.subr.bf16.mxu0 %v968_v43 }
  0x2b   :  { %338 = vmatpush2.bf16.msra.mxu0 %v970_v46 }
  0x2c   :  { %339 = vmatprep.subr.bf16.mxu0 %v971_v48 }
  0x2f   :  { %340 = vmatpush2.bf16.msra.mxu0 %v975_v50 }
  0x30   :  { %341 = vmatprep.subr.bf16.mxu0 %v977_v52 }
  0x31   :  { %14 = vsyncpa [#allocation3], 0  ;;  %v987_v55 = vld [vmem:[%s1347_s1 + $0xa0] ss:$8 sps:$4 sm:$0xff]   ;;  %v989_v56 = vld [vmem:[%s1347_s1 + $0x94] ss:$8 sps:$4 sm:$0xff]  }
  0x32   :  { %v993_v57 = vld [vmem:[%s1347_s1 + $0x90] ss:$8 sps:$4 sm:$0xff]   ;;  %v995_v58 = vld [vmem:[%s1347_s1 + $0x84] ss:$8 sps:$4 sm:$0xff]   ;;  %v997_v59 = vld [vmem:[%s1347_s1 + $0x80] ss:$8 sps:$4 sm:$0xff]  }
  0x33   :  { %342 = vmatpush2.bf16.msra.mxu0 %v981_v53  ;;  %v1006_v60 = vld [vmem:[%s1349_s3 + $0x58] sm:$0xff]   ;;  %v1008_v62 = vld [vmem:[%s1349_s3 + $0x50] sm:$0xff]   ;;  %v1010_v0 = vld [vmem:[%s1349_s3 + $0x48] sm:$0xff]   ;;  %v1050_v4 = vmov 0.0   ;;  %v79_v9 = vsub.s32 0, %v1142_v17  ;;  %v83_v11 = vsub.s32 1, %v1142_v17 }
  0x34   :  { %343 = vmatprep.subr.bf16.mxu0 %v983_v54  ;;  %v1007_v61 = vld [vmem:[%s1349_s3 + $0x18] sm:$0xff]   ;;  %873 = vmatprep.subr.bf16.mxu1 %v1006_v60  ;;  %v1009_v63 = vld [vmem:[%s1349_s3 + $0x10] sm:$0xff]   ;;  %v1011_v1 = vld [vmem:[%s1349_s3 + $0x8] sm:$0xff]   ;;  %vm1051_vm1 = vmmov 0   ;;  %s1052_s17 = smov [#allocation2]   ;;  %vm775_vm2 = vcmask 74752  }
  0x35   :  { %874 = vmatpush3.bf16.msra.mxu1 %v1007_v61  ;;  %v1012_v2 = vld [vmem:[%s1349_s3 + $0x40] sm:$0xff]   ;;  %v1014_v26 = vld [vmem:[%s1351_s5 + $0x38] sm:$0xff]   ;;  %v1015_v17 = vld [vmem:[%s1351_s5 + $0x30] sm:$0xff]  }
  0x36   :  { %875 = vmatprep.subr.bf16.mxu1 %v1008_v62  ;;  %v1013_v3 = vld [vmem:[%s1349_s3] sm:$0xff]   ;;  %v1016_v28 = vld [vmem:[%s1351_s5 + $0x28] sm:$0xff]   ;;  %v1018_v30 = vld [vmem:[%s1351_s5 + $0x18] sm:$0xff]  }
  0x37   :  { %344 = vmatpush2.bf16.msra.mxu0 %v987_v55  ;;  %v75_v10 = vld [vmem:[%s1348_s2] sm:$0x3]  ;;  %v1019_v31 = vld [vmem:[%s1351_s5 + $0x10] sm:$0xff]   ;;  %v1022_v34 = vld [vmem:[%s1353_s7 + $0x18] sm:$0xff]  }
  0x38   :  { %345 = vmatprep.subr.bf16.mxu0 %v989_v56  ;;  %v80_v12 = vrot.slane %v75_v10, %v79_v9  ;;  %v84_v13 = vrot.slane %v75_v10, %v83_v11  ;;  %v1017_v29 = vld [vmem:[%s1351_s5 + $0x20] sm:$0xff]   ;;  %v1023_v35 = vld [vmem:[%s1353_s7 + $0x10] sm:$0xff]   ;;  %v1024_v45 = vld [vmem:[%s1353_s7 + $0x8] sm:$0xff]  }
  0x39   :  { %876 = vmatpush3.bf16.msra.mxu1 %v1009_v63  ;;  %v1021_v33 = vld [vmem:[%s1351_s5] sm:$0xff]  }
  0x3a   :  { %877 = vmatprep.subr.bf16.mxu1 %v1010_v0  ;;  %v833_v37 = vld [vmem:[%s1350_s4] ss:$0 sm:$0xff] }
  0x3b   :  { %346 = vmatpush2.bf16.msra.mxu0 %v993_v57  ;;  %v1025_v46 = vld [vmem:[%s1353_s7] sm:$0xff]   ;;  %s783_s7 = sshll.u32 %s1052_s17, 4  ;;  %s784_s7 = int_to_ptr.vmem [resolvable:$true] %s783_s7 }
  0x3c   :  { %347 = vmatprep.subr.bf16.mxu0 %v995_v58  ;;  %v850_v47 = vld [vmem:[%s1352_s6] ss:$0 sm:$0xff]  ;;  %s1026_s6 = scalar_lea.vmem %s784_s7, 32  ;;  %p1031_p1 = scmp.lt.s32.totalorder %s784_s7, %s784_s7 }
  0x3d   :  { %878 = vmatpush3.bf16.msra.mxu1 %v1011_v1  ;;  %v859_v55 = vld [vmem:[%s1354_s8] ss:$0 sm:$0xff]  ;;  %p1027_p0 = scmp.ne.s32.totalorder %s784_s7, %s1026_s6  ;;  %p1032_p2 = scmp.lt.s32.totalorder %s1026_s6, %s1026_s6 }
  0x3e   :  { %879 = vmatprep.subr.bf16.mxu1 %v1012_v2 }
  0x3f   :  { %348 = vmatpush2.bf16.msra.mxu0 %v997_v59  ;;  %p1033_p3 = por %p1032_p2, %p1031_p1 }
  0x40   :  { %921 = vmatprep.subr.bf16.mxu0 %v1050_v4 }
  0x41   :  { %880 = vmatpush3.bf16.msra.mxu1 %v1013_v3  ;;  %p1034_p4 = pnand %p1033_p3, %p1027_p0 }
  0x42   :  { %350 = vmatmul.mubr.bf16.vlgmr.msra.gmra.mxu0 %v102_v32  ;;  %901 = vmatprep.subr.bf16.mxu1 %v1050_v4  ;;  %v1020_v32 = vld [vmem:[%s1351_s5 + $0x8] sm:$0xff]  }
  0x43   :  { %929 = vmatprep.mubr.msk.bf16.mxu0 %vm1051_vm1, %v1050_v4  ;;  %922 = vmatpush3.bf16.msra.mxu0 %v1022_v34 }
  0x44   :  { %923 = vmatprep.subr.bf16.mxu0 %v1050_v4 }
  0x47   :  { %924 = vmatpush3.bf16.msra.mxu0 %v1023_v35 }
  0x48   :  { %925 = vmatprep.subr.bf16.mxu0 %v1050_v4 }
  0x4b   :  { %926 = vmatpush3.bf16.msra.mxu0 %v1024_v45 }
  0x4c   :  { %927 = vmatprep.subr.bf16.mxu0 %v1050_v4 }
  0x4f   :  { %928 = vmatpush3.bf16.msra.mxu0 %v1025_v46 }
  0xd5   :  { %v392_v5 = vpop.f32.mrf.mxu1 }
  0xd7   :  { %v394_v6 = vpop.f32.mrf.mxu1 }
  0xd9   :  { %v396_v7 = vpop.f32.mrf.mxu1 }
  0xdb   :  { %v397_v8 = vpop.f32.mrf.mxu1 }
 0x102   :  { %v351_v14 = vpop.f32.mrf.mxu0 }
 0x103   :  { %v352_v15 = vadd.f32 %v351_v14, %v80_v12 }
 0x104   :  { %v353_v16 = vpop.f32.mrf.mxu0 }
 0x105   :  { %v393_v18 = vadd.f32 %v392_v5, %v352_v15  ;;  %v354_v19 = vadd.f32 %v353_v16, %v84_v13 }
 0x106   :  { %v355_v20 = vpop.f32.mrf.mxu0 }
 0x107   :  { %v395_v21 = vadd.f32 %v394_v6, %v354_v19  ;;  %v399_v22 = vmax.f32 %v393_v18, 0.0 }
 0x108   :  { %v356_v23 = vpop.f32.mrf.mxu0 }
 0x109   :  { %v400_v24 = vmax.f32 %v395_v21, 0.0  ;;  %v401_v27 = vpack.c.bf16 %v399_v22, %v399_v22 }
 0x10b   :  { %v402_v25 = vpack.c.bf16 %v400_v24, %v400_v24 }
 0x10d   :  { %570 = vmatprep.mubr.bf16.mxu1 %v402_v25 }
 0x10e   :  { %571 = vmatmul.mubr.bf16.vlgmr.msra.gmra.mxu1 %v401_v27 }
 0x10f   :  { %902 = vmatpush3.bf16.msra.mxu1 %v1014_v26  ;;  %917 = vmatprep.mubr.msk.bf16.mxu1 %vm1051_vm1, %v1050_v4 }
 0x110   :  { %903 = vmatprep.subr.bf16.mxu1 %v1050_v4 }
 0x113   :  { %904 = vmatpush3.bf16.msra.mxu1 %v1015_v17 }
 0x114   :  { %905 = vmatprep.subr.bf16.mxu1 %v1050_v4 }
 0x117   :  { %906 = vmatpush3.bf16.msra.mxu1 %v1016_v28 }
 0x118   :  { %907 = vmatprep.subr.bf16.mxu1 %v1050_v4 }
 0x11b   :  { %908 = vmatpush3.bf16.msra.mxu1 %v1017_v29 }
 0x11c   :  { %909 = vmatprep.subr.bf16.mxu1 %v1050_v4 }
 0x11f   :  { %910 = vmatpush3.bf16.msra.mxu1 %v1018_v30 }
 0x120   :  { %911 = vmatprep.subr.bf16.mxu1 %v1050_v4 }
 0x123   :  { %912 = vmatpush3.bf16.msra.mxu1 %v1019_v31 }
 0x124   :  { %913 = vmatprep.subr.bf16.mxu1 %v1050_v4 }
 0x127   :  { %914 = vmatpush3.bf16.msra.mxu1 %v1020_v32 }
 0x128   :  { %915 = vmatprep.subr.bf16.mxu1 %v1050_v4 }
 0x12b   :  { %916 = vmatpush3.bf16.msra.mxu1 %v1021_v33 }
 0x1ce   :  { %v881_v36 = vpop.f32.mrf.mxu1 }
 0x1d0   :  { %v882_v38 = vpop.f32.mrf.mxu1 }
 0x1d1   :  { %v883_v39 = vadd.f32 %v882_v38, %v881_v36 }
 0x1d2   :  { %v884_v40 = vpop.f32.mrf.mxu1 }
 0x1d3   :  { %v573_v41 = vadd.f32 %v883_v39, %v833_v37 }
 0x1d4   :  { %v885_v42 = vpop.f32.mrf.mxu1 }
 0x1d5   :  { %v578_v43 = vmax.f32 %v573_v41, 0.0 }
 0x1d7   :  { %v579_v44 = vpack.c.bf16 %v578_v43, %v578_v43 }
 0x1d9   :  { %918 = vmatmul.mubr.bf16.vlgmr.msra.gmra.mxu1 %v579_v44 }
 0x299   :  { %v685_v48 = vpop.f32.mrf.mxu1 }
 0x29a   :  { %v686_v49 = vadd.f32 %v850_v47, %v685_v48 }
 0x29b   :  { %v919_v50 = vpop.f32.mrf.mxu1 }
 0x29c   :  { %v691_v51 = vmax.f32 %v686_v49, 0.0 }
 0x29d   :  { %v688_v52 = vpop.f32.mrf.mxu1 }
 0x29e   :  { %v692_v53 = vpack.c.bf16 %v691_v51, %v691_v51 }
 0x29f   :  { %v920_v54 = vpop.f32.mrf.mxu1 }
 0x2a0   :  { %930 = vmatmul.mubr.msk.bf16.vlgmr.msra.gmra.mxu0 %vm313_vm0, %v692_v53 }
 0x360   :  { %v769_v56 = vpop.f32.mrf.mxu0 }
 0x361   :  { %v770_v57 = vadd.f32 %v859_v55, %v769_v56 }
 0x362   :  { %v931_v58 = vpop.f32.mrf.mxu0 }
 0x363   :  { %776 = vst.msk [vmem:[#allocation2] sm:$0x3] %vm775_vm2, %v770_v57 }
 0x364   :  { %v772_v59 = vpop.f32.mrf.mxu0 }
 0x365   :  { %1037 = shalt.err (!%p1034_p4)
}
 0x366   :  { %786 = dma.vmem_to_hbm [thread:$0]  %s784_s7, 32, %s1355_s9, [#allocation3]   ;;  %v932_v60 = vpop.f32.mrf.mxu0 }
 0x367   :  { %1046 = dma.done.wait [#allocation3], 32  }
 0x368   :  { %1047 = vsyncadd [#allocation3], 4294967264 }
 0x369   :  { %790 = vsyncpa [#allocation3], 1 }

</bundles_post_ra>
